<compile_context>
chip_gen: v7x
topology: tpu7x:2x2x1
jax: 0.10.0
libtpu: 0.0.40
codegen_flags: <defaults>
</compile_context>

<pallas_src>
import functools

import jax
import jax.numpy as jnp
from jax.experimental import pallas as pl
from jax.experimental.pallas import tpu as pltpu

OUT_PAD = 128  # lane-dense output slab width


def _make_kernel(input_dim, hidden_dim, num_layers, seq_len, batch, out_pad):
    H = hidden_dim
    B = batch
    T = seq_len

    def kernel(*refs):
        # --- unpack refs (packed layout, 9 inputs + 1 output) -------------
        idx = 0
        x_ref = refs[idx]; idx += 1                      # (T*B, Din) bf16, time-major
        w_refs = refs[idx:idx + num_layers]; idx += num_layers   # packed [wih;whh]
        b_ref = refs[idx]; idx += 1                      # (num_layers, 4H) f32
        fc1_r, fc2_r, fc3_r, fc4_r = refs[idx:idx + 4]; idx += 4  # bf16 weights
        fcb_r = refs[idx]; idx += 1                      # (4, 256) f32 packed biases
        out_ref = refs[idx]                              # (B, out_pad) f32

        f32 = jnp.float32
        bf16 = jnp.bfloat16

        # --- hoisted weight / bias loads (once, outside unrolled loops) ---
        w0 = w_refs[0][...]                              # (Din+H, 4H) bf16
        wih0 = w0[:input_dim, :]                         # (Din, 4H)
        whh0 = w0[input_dim:input_dim + H, :]            # (H, 4H)
        wl = []
        for l in range(1, num_layers):
            wpack = w_refs[l][...]                       # (2H, 4H) bf16
            wl.append((wpack[:H, :], wpack[H:2 * H, :])) # (wih_l, whh_l)
        bias = b_ref[...]                                # (num_layers, 4H) f32
        b_rows = [bias[l:l + 1, :] for l in range(num_layers)]

        # --- layer-0 input projection for ALL timesteps: one MXU matmul ---
        # (off the serial critical path; bias folded in here)
        gx0 = jnp.dot(x_ref[...], wih0, preferred_element_type=f32) + b_rows[0]

        def cell(g, c):
            # One sigmoid + one tanh over the full (B, 4H) gate vreg, then
            # static 32-lane slices (PyTorch gate order i, f, g, o).
            sg = jax.nn.sigmoid(g)
            tg = jnp.tanh(g)
            i_g = sg[:, 0 * H:1 * H]
            f_g = sg[:, 1 * H:2 * H]
            g_g = tg[:, 2 * H:3 * H]
            o_g = sg[:, 3 * H:4 * H]
            c_new = f_g * c + i_g * g_g
            h_new = o_g * jnp.tanh(c_new)
            return h_new, c_new

        h = [jnp.zeros((B, H), f32) for _ in range(num_layers)]
        c = [jnp.zeros((B, H), f32) for _ in range(num_layers)]

        # --- wavefront recurrence: time-outer / layer-inner, fully unrolled
        # Critical path = T + num_layers - 1 dependent steps (was T*num_layers).
        for t in range(T):
            g0 = gx0[t * B:(t + 1) * B, :] + jnp.dot(
                h[0].astype(bf16), whh0, preferred_element_type=f32)
            h[0], c[0] = cell(g0, c[0])
            for l in range(1, num_layers):
                wih_l, whh_l = wl[l - 1]
                # Two small independent dots: the whh dot only depends on the
                # previous timestep's h[l] and can issue ahead of h[l-1].
                gl = (jnp.dot(h[l - 1].astype(bf16), wih_l, preferred_element_type=f32)
                      + jnp.dot(h[l].astype(bf16), whh_l, preferred_element_type=f32)
                      + b_rows[l])
                h[l], c[l] = cell(gl, c[l])

        # --- MLP head (NO ReLU after fc1, matching the PyTorch forward) ---
        fcb = fcb_r[...]                                 # (4, 256) f32
        y = jnp.dot(h[-1].astype(bf16), fc1_r[...], preferred_element_type=f32) + fcb[0:1, :256]
        y = jnp.dot(y.astype(bf16), fc2_r[...], preferred_element_type=f32) + fcb[1:2, :128]
        y = jnp.maximum(y, 0.0)
        y = jnp.dot(y.astype(bf16), fc3_r[...], preferred_element_type=f32) + fcb[2:3, :32]
        y = jnp.maximum(y, 0.0)
        y = jnp.dot(y.astype(bf16), fc4_r[...], preferred_element_type=f32) + fcb[3:4, :out_pad]
        y = jnp.maximum(y, 0.0)
        out_ref[...] = y                                 # lane-dense (B, 128) store

    return kernel


def init_params(key, input_dim, hidden_dim, num_layers, output_dim):
    """Deterministic synthetic parameters, PyTorch-shaped, then packed:
       - per LSTM layer: [w_ih.T ; w_hh.T] -> (Din+H, 4H) bf16
       - LSTM biases (b_ih + b_hh) stacked -> (num_layers, 4H) f32
       - FC weights transposed to (d_in, d_out) bf16, fc4 lane-padded to 128
       - FC biases lane-padded to 256 and stacked -> (4, 256) f32
    """
    H = hidden_dim
    assert output_dim <= OUT_PAD
    lstm_w, lstm_b = [], []
    for l in range(num_layers):
        d_in = input_dim if l == 0 else H
        key, k1, k2, k3, k4 = jax.random.split(key, 5)
        scale = 1.0 / jnp.sqrt(H)
        w_ih = jax.random.uniform(k1, (4 * H, d_in), jnp.float32, -scale, scale)
        w_hh = jax.random.uniform(k2, (4 * H, H), jnp.float32, -scale, scale)
        b_ih = jax.random.uniform(k3, (4 * H,), jnp.float32, -scale, scale)
        b_hh = jax.random.uniform(k4, (4 * H,), jnp.float32, -scale, scale)
        lstm_w.append(jnp.concatenate([w_ih.T, w_hh.T], axis=0).astype(jnp.bfloat16))
        lstm_b.append(b_ih + b_hh)
    lstm_b = jnp.stack(lstm_b, axis=0)                   # (num_layers, 4H) f32

    dims = [(H, 256), (256, 128), (128, 32), (32, output_dim)]
    fc_w, fc_b_rows = [], []
    for i, (d_in, d_out) in enumerate(dims):
        key, k1, k2 = jax.random.split(key, 3)
        scale = 1.0 / jnp.sqrt(d_in)
        w = jax.random.uniform(k1, (d_out, d_in), jnp.float32, -scale, scale)
        b = jax.random.uniform(k2, (d_out,), jnp.float32, -scale, scale)
        wt = w.T                                         # (d_in, d_out)
        if i == len(dims) - 1:
            wt = jnp.pad(wt, ((0, 0), (0, OUT_PAD - d_out)))  # lane-dense head
        fc_w.append(wt.astype(jnp.bfloat16))
        fc_b_rows.append(jnp.pad(b, (0, 256 - d_out)))
    fc_b = jnp.stack(fc_b_rows, axis=0)                  # (4, 256) f32
    return {"lstm_w": lstm_w, "lstm_b": lstm_b, "fc_w": fc_w, "fc_b": fc_b}


@functools.partial(jax.jit, static_argnames=("input_dim", "hidden_dim",
                                             "num_layers", "output_dim"))
def lst_model_ann_forward(x, params, *, input_dim, hidden_dim, num_layers, output_dim):
    """x: (B, T, input_dim) batch-first, like the PyTorch module."""
    B, T, D = x.shape
    # time-major, flattened to (T*B, D): rows [t*B, (t+1)*B) are timestep t.
    # Cast to bf16 (MXU-native; halves the x DMA).
    x_tm = jnp.transpose(x, (1, 0, 2)).reshape(T * B, D).astype(jnp.bfloat16)

    flat_inputs = ([x_tm]
                   + list(params["lstm_w"])
                   + [params["lstm_b"]]
                   + list(params["fc_w"])
                   + [params["fc_b"]])

    kernel = _make_kernel(input_dim, hidden_dim, num_layers, T, B, OUT_PAD)
    vmem = pl.BlockSpec(memory_space=pltpu.MemorySpace.VMEM)
    # No grid: whole problem (<1 MiB) lives in VMEM; default scoped VMEM limit
    # is plenty on all generations (incl. v7x's 64 MiB physical VMEM).
    out = pl.pallas_call(
        kernel,
        out_shape=jax.ShapeDtypeStruct((B, OUT_PAD), jnp.float32),
        in_specs=[vmem] * len(flat_inputs),
        out_specs=vmem,
    )(*flat_inputs)
    return out[:, :output_dim]


def _reference_forward(x, params, input_dim, hidden_dim, num_layers, output_dim):
    """Pure-JAX f32 reference of the same forward (weights are the stored
    bf16 values upcast to f32; only the kernel's activation rounding differs)."""
    B, T, _ = x.shape
    H = hidden_dim
    inp = x.astype(jnp.bfloat16).astype(jnp.float32)     # kernel quantizes x to bf16
    for l in range(num_layers):
        d_in = input_dim if l == 0 else H
        pack = params["lstm_w"][l].astype(jnp.float32)
        wih, whh = pack[:d_in], pack[d_in:d_in + H]
        b = params["lstm_b"][l:l + 1]
        h = jnp.zeros((B, H), jnp.float32)
        c = jnp.zeros((B, H), jnp.float32)
        outs = []
        for t in range(T):
            g = inp[:, t, :] @ wih + h @ whh + b
            i = jax.nn.sigmoid(g[:, 0 * H:1 * H])
            f = jax.nn.sigmoid(g[:, 1 * H:2 * H])
            gg = jnp.tanh(g[:, 2 * H:3 * H])
            o = jax.nn.sigmoid(g[:, 3 * H:4 * H])
            c = f * c + i * gg
            h = o * jnp.tanh(c)
            outs.append(h)
        inp = jnp.stack(outs, axis=1)
    y = inp[:, -1, :]
    fcw = [w.astype(jnp.float32) for w in params["fc_w"]]
    fcb = params["fc_b"]
    y = y @ fcw[0] + fcb[0:1, :256]
    y = jnp.maximum(y @ fcw[1] + fcb[1:2, :128], 0.0)
    y = jnp.maximum(y @ fcw[2] + fcb[2:3, :32], 0.0)
    y = jnp.maximum(y @ fcw[3] + fcb[3:4, :OUT_PAD], 0.0)
    return y[:, :output_dim]


if __name__ == "__main__":
    input_dim, hidden_dim, num_layers, output_dim = 16, 32, 2, 4
    batch, seq = 8, 8

    key = jax.random.PRNGKey(0)
    k_x, k_p = jax.random.split(key)
    x = jax.random.normal(k_x, (batch, seq, input_dim), jnp.float32)
    params = init_params(k_p, input_dim, hidden_dim, num_layers, output_dim)

    out = lst_model_ann_forward(
        x, params,
        input_dim=input_dim, hidden_dim=hidden_dim,
        num_layers=num_layers, output_dim=output_dim)
    out = jax.block_until_ready(out)

    ref = _reference_forward(x, params, input_dim, hidden_dim, num_layers, output_dim)
    assert out.shape == (batch, output_dim)
    # 2e-2 tolerance covers bf16 matmul-operand rounding compounded over T=8
    # recurrent steps (weights are identical bf16 values in kernel and ref).
    assert jnp.max(jnp.abs(out - ref)) < 2e-2, "mismatch vs pure-JAX reference"

    print("KERNEL_OK")
</pallas_src>

<mosaic_0001>
module attributes {stable_mosaic.version = 11 : i64} {
  func.func @kernel(%arg0: memref<64x16xbf16, #tpu.memory_space<vmem>>, %arg1: memref<48x128xbf16, #tpu.memory_space<vmem>>, %arg2: memref<64x128xbf16, #tpu.memory_space<vmem>>, %arg3: memref<2x128xf32, #tpu.memory_space<vmem>>, %arg4: memref<32x256xbf16, #tpu.memory_space<vmem>>, %arg5: memref<256x128xbf16, #tpu.memory_space<vmem>>, %arg6: memref<128x32xbf16, #tpu.memory_space<vmem>>, %arg7: memref<32x128xbf16, #tpu.memory_space<vmem>>, %arg8: memref<4x256xf32, #tpu.memory_space<vmem>>, %arg9: memref<8x128xf32, #tpu.memory_space<vmem>>) attributes {dimension_semantics = [], scalar_prefetch = 0 : i64, scratch_operands = 0 : i64, tpu.core_type = #tpu.core_type<tc>} {
    %c0 = arith.constant 0 : index
    %c0_0 = arith.constant 0 : index
    %0 = vector.load %arg1[%c0, %c0_0] : memref<48x128xbf16, #tpu.memory_space<vmem>>, vector<48x128xbf16>
    %1 = vector.extract_strided_slice %0 {offsets = [0, 0], sizes = [16, 128], strides = [1, 1]} : vector<48x128xbf16> to vector<16x128xbf16>
    %2 = vector.extract_strided_slice %0 {offsets = [16, 0], sizes = [32, 128], strides = [1, 1]} : vector<48x128xbf16> to vector<32x128xbf16>
    %c0_1 = arith.constant 0 : index
    %c0_2 = arith.constant 0 : index
    %3 = vector.load %arg2[%c0_1, %c0_2] : memref<64x128xbf16, #tpu.memory_space<vmem>>, vector<64x128xbf16>
    %4 = vector.extract_strided_slice %3 {offsets = [0, 0], sizes = [32, 128], strides = [1, 1]} : vector<64x128xbf16> to vector<32x128xbf16>
    %5 = vector.extract_strided_slice %3 {offsets = [32, 0], sizes = [32, 128], strides = [1, 1]} : vector<64x128xbf16> to vector<32x128xbf16>
    %c0_3 = arith.constant 0 : index
    %c0_4 = arith.constant 0 : index
    %6 = vector.load %arg3[%c0_3, %c0_4] : memref<2x128xf32, #tpu.memory_space<vmem>>, vector<2x128xf32>
    %7 = vector.extract_strided_slice %6 {offsets = [0, 0], sizes = [1, 128], strides = [1, 1]} : vector<2x128xf32> to vector<1x128xf32>
    %8 = vector.extract_strided_slice %6 {offsets = [1, 0], sizes = [1, 128], strides = [1, 1]} : vector<2x128xf32> to vector<1x128xf32>
    %c0_5 = arith.constant 0 : index
    %c0_6 = arith.constant 0 : index
    %9 = vector.load %arg0[%c0_5, %c0_6] : memref<64x16xbf16, #tpu.memory_space<vmem>>, vector<64x16xbf16>
    %cst = arith.constant dense<0.000000e+00> : vector<64x128xf32>
    %10 = tpu.matmul %9, %1, %cst {dimension_numbers = #tpu.dot_dimension_numbers<[1], [0], [0], [1], [0, 0, 1, 1], [], []>} : vector<64x16xbf16>, vector<16x128xbf16>, vector<64x128xf32> -> vector<64x128xf32>
    %11 = vector.broadcast %7 : vector<1x128xf32> to vector<64x128xf32>
    %12 = arith.addf %10, %11 : vector<64x128xf32>
    %cst_7 = arith.constant 0.000000e+00 : f32
    %13 = vector.broadcast %cst_7 : f32 to vector<8x32xf32>
    %cst_8 = arith.constant 0.000000e+00 : f32
    %14 = vector.broadcast %cst_8 : f32 to vector<8x32xf32>
    %cst_9 = arith.constant 0.000000e+00 : f32
    %15 = vector.broadcast %cst_9 : f32 to vector<8x32xf32>
    %cst_10 = arith.constant 0.000000e+00 : f32
    %16 = vector.broadcast %cst_10 : f32 to vector<8x32xf32>
    %17 = vector.extract_strided_slice %12 {offsets = [0, 0], sizes = [8, 128], strides = [1, 1]} : vector<64x128xf32> to vector<8x128xf32>
    %18 = arith.truncf %13 : vector<8x32xf32> to vector<8x32xbf16>
    %cst_11 = arith.constant dense<0.000000e+00> : vector<8x128xf32>
    %19 = tpu.matmul %18, %2, %cst_11 {dimension_numbers = #tpu.dot_dimension_numbers<[1], [0], [0], [1], [0, 0, 1, 1], [], []>} : vector<8x32xbf16>, vector<32x128xbf16>, vector<8x128xf32> -> vector<8x128xf32>
    %20 = arith.addf %17, %19 : vector<8x128xf32>
    %21 = arith.negf %20 : vector<8x128xf32>
    %22 = math.exp %21 : vector<8x128xf32>
    %cst_12 = arith.constant 1.000000e+00 : f32
    %23 = vector.broadcast %cst_12 : f32 to vector<8x128xf32>
    %24 = arith.addf %23, %22 : vector<8x128xf32>
    %25 = arith.divf %23, %24 : vector<8x128xf32>
    %26 = math.tanh %20 : vector<8x128xf32>
    %27 = vector.extract_strided_slice %25 {offsets = [0, 0], sizes = [8, 32], strides = [1, 1]} : vector<8x128xf32> to vector<8x32xf32>
    %28 = vector.extract_strided_slice %25 {offsets = [0, 32], sizes = [8, 32], strides = [1, 1]} : vector<8x128xf32> to vector<8x32xf32>
    %29 = vector.extract_strided_slice %26 {offsets = [0, 64], sizes = [8, 32], strides = [1, 1]} : vector<8x128xf32> to vector<8x32xf32>
    %30 = vector.extract_strided_slice %25 {offsets = [0, 96], sizes = [8, 32], strides = [1, 1]} : vector<8x128xf32> to vector<8x32xf32>
    %31 = arith.mulf %28, %15 : vector<8x32xf32>
    %32 = arith.mulf %27, %29 : vector<8x32xf32>
    %33 = arith.addf %31, %32 : vector<8x32xf32>
    %34 = math.tanh %33 : vector<8x32xf32>
    %35 = arith.mulf %30, %34 : vector<8x32xf32>
    %36 = arith.truncf %35 : vector<8x32xf32> to vector<8x32xbf16>
    %cst_13 = arith.constant dense<0.000000e+00> : vector<8x128xf32>
    %37 = tpu.matmul %36, %4, %cst_13 {dimension_numbers = #tpu.dot_dimension_numbers<[1], [0], [0], [1], [0, 0, 1, 1], [], []>} : vector<8x32xbf16>, vector<32x128xbf16>, vector<8x128xf32> -> vector<8x128xf32>
    %38 = arith.truncf %14 : vector<8x32xf32> to vector<8x32xbf16>
    %cst_14 = arith.constant dense<0.000000e+00> : vector<8x128xf32>
    %39 = tpu.matmul %38, %5, %cst_14 {dimension_numbers = #tpu.dot_dimension_numbers<[1], [0], [0], [1], [0, 0, 1, 1], [], []>} : vector<8x32xbf16>, vector<32x128xbf16>, vector<8x128xf32> -> vector<8x128xf32>
    %40 = arith.addf %37, %39 : vector<8x128xf32>
    %41 = vector.broadcast %8 : vector<1x128xf32> to vector<8x128xf32>
    %42 = arith.addf %40, %41 : vector<8x128xf32>
    %43 = arith.negf %42 : vector<8x128xf32>
    %44 = math.exp %43 : vector<8x128xf32>
    %cst_15 = arith.constant 1.000000e+00 : f32
    %45 = vector.broadcast %cst_15 : f32 to vector<8x128xf32>
    %46 = arith.addf %45, %44 : vector<8x128xf32>
    %47 = arith.divf %45, %46 : vector<8x128xf32>
    %48 = math.tanh %42 : vector<8x128xf32>
    %49 = vector.extract_strided_slice %47 {offsets = [0, 0], sizes = [8, 32], strides = [1, 1]} : vector<8x128xf32> to vector<8x32xf32>
    %50 = vector.extract_strided_slice %47 {offsets = [0, 32], sizes = [8, 32], strides = [1, 1]} : vector<8x128xf32> to vector<8x32xf32>
    %51 = vector.extract_strided_slice %48 {offsets = [0, 64], sizes = [8, 32], strides = [1, 1]} : vector<8x128xf32> to vector<8x32xf32>
    %52 = vector.extract_strided_slice %47 {offsets = [0, 96], sizes = [8, 32], strides = [1, 1]} : vector<8x128xf32> to vector<8x32xf32>
    %53 = arith.mulf %50, %16 : vector<8x32xf32>
    %54 = arith.mulf %49, %51 : vector<8x32xf32>
    %55 = arith.addf %53, %54 : vector<8x32xf32>
    %56 = math.tanh %55 : vector<8x32xf32>
    %57 = arith.mulf %52, %56 : vector<8x32xf32>
    %58 = vector.extract_strided_slice %12 {offsets = [8, 0], sizes = [8, 128], strides = [1, 1]} : vector<64x128xf32> to vector<8x128xf32>
    %59 = arith.truncf %35 : vector<8x32xf32> to vector<8x32xbf16>
    %cst_16 = arith.constant dense<0.000000e+00> : vector<8x128xf32>
    %60 = tpu.matmul %59, %2, %cst_16 {dimension_numbers = #tpu.dot_dimension_numbers<[1], [0], [0], [1], [0, 0, 1, 1], [], []>} : vector<8x32xbf16>, vector<32x128xbf16>, vector<8x128xf32> -> vector<8x128xf32>
    %61 = arith.addf %58, %60 : vector<8x128xf32>
    %62 = arith.negf %61 : vector<8x128xf32>
    %63 = math.exp %62 : vector<8x128xf32>
    %cst_17 = arith.constant 1.000000e+00 : f32
    %64 = vector.broadcast %cst_17 : f32 to vector<8x128xf32>
    %65 = arith.addf %64, %63 : vector<8x128xf32>
    %66 = arith.divf %64, %65 : vector<8x128xf32>
    %67 = math.tanh %61 : vector<8x128xf32>
    %68 = vector.extract_strided_slice %66 {offsets = [0, 0], sizes = [8, 32], strides = [1, 1]} : vector<8x128xf32> to vector<8x32xf32>
    %69 = vector.extract_strided_slice %66 {offsets = [0, 32], sizes = [8, 32], strides = [1, 1]} : vector<8x128xf32> to vector<8x32xf32>
    %70 = vector.extract_strided_slice %67 {offsets = [0, 64], sizes = [8, 32], strides = [1, 1]} : vector<8x128xf32> to vector<8x32xf32>
    %71 = vector.extract_strided_slice %66 {offsets = [0, 96], sizes = [8, 32], strides = [1, 1]} : vector<8x128xf32> to vector<8x32xf32>
    %72 = arith.mulf %69, %33 : vector<8x32xf32>
    %73 = arith.mulf %68, %70 : vector<8x32xf32>
    %74 = arith.addf %72, %73 : vector<8x32xf32>
    %75 = math.tanh %74 : vector<8x32xf32>
    %76 = arith.mulf %71, %75 : vector<8x32xf32>
    %77 = arith.truncf %76 : vector<8x32xf32> to vector<8x32xbf16>
    %cst_18 = arith.constant dense<0.000000e+00> : vector<8x128xf32>
    %78 = tpu.matmul %77, %4, %cst_18 {dimension_numbers = #tpu.dot_dimension_numbers<[1], [0], [0], [1], [0, 0, 1, 1], [], []>} : vector<8x32xbf16>, vector<32x128xbf16>, vector<8x128xf32> -> vector<8x128xf32>
    %79 = arith.truncf %57 : vector<8x32xf32> to vector<8x32xbf16>
    %cst_19 = arith.constant dense<0.000000e+00> : vector<8x128xf32>
    %80 = tpu.matmul %79, %5, %cst_19 {dimension_numbers = #tpu.dot_dimension_numbers<[1], [0], [0], [1], [0, 0, 1, 1], [], []>} : vector<8x32xbf16>, vector<32x128xbf16>, vector<8x128xf32> -> vector<8x128xf32>
    %81 = arith.addf %78, %80 : vector<8x128xf32>
    %82 = vector.broadcast %8 : vector<1x128xf32> to vector<8x128xf32>
    %83 = arith.addf %81, %82 : vector<8x128xf32>
    %84 = arith.negf %83 : vector<8x128xf32>
    %85 = math.exp %84 : vector<8x128xf32>
    %cst_20 = arith.constant 1.000000e+00 : f32
    %86 = vector.broadcast %cst_20 : f32 to vector<8x128xf32>
    %87 = arith.addf %86, %85 : vector<8x128xf32>
    %88 = arith.divf %86, %87 : vector<8x128xf32>
    %89 = math.tanh %83 : vector<8x128xf32>
    %90 = vector.extract_strided_slice %88 {offsets = [0, 0], sizes = [8, 32], strides = [1, 1]} : vector<8x128xf32> to vector<8x32xf32>
    %91 = vector.extract_strided_slice %88 {offsets = [0, 32], sizes = [8, 32], strides = [1, 1]} : vector<8x128xf32> to vector<8x32xf32>
    %92 = vector.extract_strided_slice %89 {offsets = [0, 64], sizes = [8, 32], strides = [1, 1]} : vector<8x128xf32> to vector<8x32xf32>
    %93 = vector.extract_strided_slice %88 {offsets = [0, 96], sizes = [8, 32], strides = [1, 1]} : vector<8x128xf32> to vector<8x32xf32>
    %94 = arith.mulf %91, %55 : vector<8x32xf32>
    %95 = arith.mulf %90, %92 : vector<8x32xf32>
    %96 = arith.addf %94, %95 : vector<8x32xf32>
    %97 = math.tanh %96 : vector<8x32xf32>
    %98 = arith.mulf %93, %97 : vector<8x32xf32>
    %99 = vector.extract_strided_slice %12 {offsets = [16, 0], sizes = [8, 128], strides = [1, 1]} : vector<64x128xf32> to vector<8x128xf32>
    %100 = arith.truncf %76 : vector<8x32xf32> to vector<8x32xbf16>
    %cst_21 = arith.constant dense<0.000000e+00> : vector<8x128xf32>
    %101 = tpu.matmul %100, %2, %cst_21 {dimension_numbers = #tpu.dot_dimension_numbers<[1], [0], [0], [1], [0, 0, 1, 1], [], []>} : vector<8x32xbf16>, vector<32x128xbf16>, vector<8x128xf32> -> vector<8x128xf32>
    %102 = arith.addf %99, %101 : vector<8x128xf32>
    %103 = arith.negf %102 : vector<8x128xf32>
    %104 = math.exp %103 : vector<8x128xf32>
    %cst_22 = arith.constant 1.000000e+00 : f32
    %105 = vector.broadcast %cst_22 : f32 to vector<8x128xf32>
    %106 = arith.addf %105, %104 : vector<8x128xf32>
    %107 = arith.divf %105, %106 : vector<8x128xf32>
    %108 = math.tanh %102 : vector<8x128xf32>
    %109 = vector.extract_strided_slice %107 {offsets = [0, 0], sizes = [8, 32], strides = [1, 1]} : vector<8x128xf32> to vector<8x32xf32>
    %110 = vector.extract_strided_slice %107 {offsets = [0, 32], sizes = [8, 32], strides = [1, 1]} : vector<8x128xf32> to vector<8x32xf32>
    %111 = vector.extract_strided_slice %108 {offsets = [0, 64], sizes = [8, 32], strides = [1, 1]} : vector<8x128xf32> to vector<8x32xf32>
    %112 = vector.extract_strided_slice %107 {offsets = [0, 96], sizes = [8, 32], strides = [1, 1]} : vector<8x128xf32> to vector<8x32xf32>
    %113 = arith.mulf %110, %74 : vector<8x32xf32>
    %114 = arith.mulf %109, %111 : vector<8x32xf32>
    %115 = arith.addf %113, %114 : vector<8x32xf32>
    %116 = math.tanh %115 : vector<8x32xf32>
    %117 = arith.mulf %112, %116 : vector<8x32xf32>
    %118 = arith.truncf %117 : vector<8x32xf32> to vector<8x32xbf16>
    %cst_23 = arith.constant dense<0.000000e+00> : vector<8x128xf32>
    %119 = tpu.matmul %118, %4, %cst_23 {dimension_numbers = #tpu.dot_dimension_numbers<[1], [0], [0], [1], [0, 0, 1, 1], [], []>} : vector<8x32xbf16>, vector<32x128xbf16>, vector<8x128xf32> -> vector<8x128xf32>
    %120 = arith.truncf %98 : vector<8x32xf32> to vector<8x32xbf16>
    %cst_24 = arith.constant dense<0.000000e+00> : vector<8x128xf32>
    %121 = tpu.matmul %120, %5, %cst_24 {dimension_numbers = #tpu.dot_dimension_numbers<[1], [0], [0], [1], [0, 0, 1, 1], [], []>} : vector<8x32xbf16>, vector<32x128xbf16>, vector<8x128xf32> -> vector<8x128xf32>
    %122 = arith.addf %119, %121 : vector<8x128xf32>
    %123 = vector.broadcast %8 : vector<1x128xf32> to vector<8x128xf32>
    %124 = arith.addf %122, %123 : vector<8x128xf32>
    %125 = arith.negf %124 : vector<8x128xf32>
    %126 = math.exp %125 : vector<8x128xf32>
    %cst_25 = arith.constant 1.000000e+00 : f32
    %127 = vector.broadcast %cst_25 : f32 to vector<8x128xf32>
    %128 = arith.addf %127, %126 : vector<8x128xf32>
    %129 = arith.divf %127, %128 : vector<8x128xf32>
    %130 = math.tanh %124 : vector<8x128xf32>
    %131 = vector.extract_strided_slice %129 {offsets = [0, 0], sizes = [8, 32], strides = [1, 1]} : vector<8x128xf32> to vector<8x32xf32>
    %132 = vector.extract_strided_slice %129 {offsets = [0, 32], sizes = [8, 32], strides = [1, 1]} : vector<8x128xf32> to vector<8x32xf32>
    %133 = vector.extract_strided_slice %130 {offsets = [0, 64], sizes = [8, 32], strides = [1, 1]} : vector<8x128xf32> to vector<8x32xf32>
    %134 = vector.extract_strided_slice %129 {offsets = [0, 96], sizes = [8, 32], strides = [1, 1]} : vector<8x128xf32> to vector<8x32xf32>
    %135 = arith.mulf %132, %96 : vector<8x32xf32>
    %136 = arith.mulf %131, %133 : vector<8x32xf32>
    %137 = arith.addf %135, %136 : vector<8x32xf32>
    %138 = math.tanh %137 : vector<8x32xf32>
    %139 = arith.mulf %134, %138 : vector<8x32xf32>
    %140 = vector.extract_strided_slice %12 {offsets = [24, 0], sizes = [8, 128], strides = [1, 1]} : vector<64x128xf32> to vector<8x128xf32>
    %141 = arith.truncf %117 : vector<8x32xf32> to vector<8x32xbf16>
    %cst_26 = arith.constant dense<0.000000e+00> : vector<8x128xf32>
    %142 = tpu.matmul %141, %2, %cst_26 {dimension_numbers = #tpu.dot_dimension_numbers<[1], [0], [0], [1], [0, 0, 1, 1], [], []>} : vector<8x32xbf16>, vector<32x128xbf16>, vector<8x128xf32> -> vector<8x128xf32>
    %143 = arith.addf %140, %142 : vector<8x128xf32>
    %144 = arith.negf %143 : vector<8x128xf32>
    %145 = math.exp %144 : vector<8x128xf32>
    %cst_27 = arith.constant 1.000000e+00 : f32
    %146 = vector.broadcast %cst_27 : f32 to vector<8x128xf32>
    %147 = arith.addf %146, %145 : vector<8x128xf32>
    %148 = arith.divf %146, %147 : vector<8x128xf32>
    %149 = math.tanh %143 : vector<8x128xf32>
    %150 = vector.extract_strided_slice %148 {offsets = [0, 0], sizes = [8, 32], strides = [1, 1]} : vector<8x128xf32> to vector<8x32xf32>
    %151 = vector.extract_strided_slice %148 {offsets = [0, 32], sizes = [8, 32], strides = [1, 1]} : vector<8x128xf32> to vector<8x32xf32>
    %152 = vector.extract_strided_slice %149 {offsets = [0, 64], sizes = [8, 32], strides = [1, 1]} : vector<8x128xf32> to vector<8x32xf32>
    %153 = vector.extract_strided_slice %148 {offsets = [0, 96], sizes = [8, 32], strides = [1, 1]} : vector<8x128xf32> to vector<8x32xf32>
    %154 = arith.mulf %151, %115 : vector<8x32xf32>
    %155 = arith.mulf %150, %152 : vector<8x32xf32>
    %156 = arith.addf %154, %155 : vector<8x32xf32>
    %157 = math.tanh %156 : vector<8x32xf32>
    %158 = arith.mulf %153, %157 : vector<8x32xf32>
    %159 = arith.truncf %158 : vector<8x32xf32> to vector<8x32xbf16>
    %cst_28 = arith.constant dense<0.000000e+00> : vector<8x128xf32>
    %160 = tpu.matmul %159, %4, %cst_28 {dimension_numbers = #tpu.dot_dimension_numbers<[1], [0], [0], [1], [0, 0, 1, 1], [], []>} : vector<8x32xbf16>, vector<32x128xbf16>, vector<8x128xf32> -> vector<8x128xf32>
    %161 = arith.truncf %139 : vector<8x32xf32> to vector<8x32xbf16>
    %cst_29 = arith.constant dense<0.000000e+00> : vector<8x128xf32>
    %162 = tpu.matmul %161, %5, %cst_29 {dimension_numbers = #tpu.dot_dimension_numbers<[1], [0], [0], [1], [0, 0, 1, 1], [], []>} : vector<8x32xbf16>, vector<32x128xbf16>, vector<8x128xf32> -> vector<8x128xf32>
    %163 = arith.addf %160, %162 : vector<8x128xf32>
    %164 = vector.broadcast %8 : vector<1x128xf32> to vector<8x128xf32>
    %165 = arith.addf %163, %164 : vector<8x128xf32>
    %166 = arith.negf %165 : vector<8x128xf32>
    %167 = math.exp %166 : vector<8x128xf32>
    %cst_30 = arith.constant 1.000000e+00 : f32
    %168 = vector.broadcast %cst_30 : f32 to vector<8x128xf32>
    %169 = arith.addf %168, %167 : vector<8x128xf32>
    %170 = arith.divf %168, %169 : vector<8x128xf32>
    %171 = math.tanh %165 : vector<8x128xf32>
    %172 = vector.extract_strided_slice %170 {offsets = [0, 0], sizes = [8, 32], strides = [1, 1]} : vector<8x128xf32> to vector<8x32xf32>
    %173 = vector.extract_strided_slice %170 {offsets = [0, 32], sizes = [8, 32], strides = [1, 1]} : vector<8x128xf32> to vector<8x32xf32>
    %174 = vector.extract_strided_slice %171 {offsets = [0, 64], sizes = [8, 32], strides = [1, 1]} : vector<8x128xf32> to vector<8x32xf32>
    %175 = vector.extract_strided_slice %170 {offsets = [0, 96], sizes = [8, 32], strides = [1, 1]} : vector<8x128xf32> to vector<8x32xf32>
    %176 = arith.mulf %173, %137 : vector<8x32xf32>
    %177 = arith.mulf %172, %174 : vector<8x32xf32>
    %178 = arith.addf %176, %177 : vector<8x32xf32>
    %179 = math.tanh %178 : vector<8x32xf32>
    %180 = arith.mulf %175, %179 : vector<8x32xf32>
    %181 = vector.extract_strided_slice %12 {offsets = [32, 0], sizes = [8, 128], strides = [1, 1]} : vector<64x128xf32> to vector<8x128xf32>
    %182 = arith.truncf %158 : vector<8x32xf32> to vector<8x32xbf16>
    %cst_31 = arith.constant dense<0.000000e+00> : vector<8x128xf32>
    %183 = tpu.matmul %182, %2, %cst_31 {dimension_numbers = #tpu.dot_dimension_numbers<[1], [0], [0], [1], [0, 0, 1, 1], [], []>} : vector<8x32xbf16>, vector<32x128xbf16>, vector<8x128xf32> -> vector<8x128xf32>
    %184 = arith.addf %181, %183 : vector<8x128xf32>
    %185 = arith.negf %184 : vector<8x128xf32>
    %186 = math.exp %185 : vector<8x128xf32>
    %cst_32 = arith.constant 1.000000e+00 : f32
    %187 = vector.broadcast %cst_32 : f32 to vector<8x128xf32>
    %188 = arith.addf %187, %186 : vector<8x128xf32>
    %189 = arith.divf %187, %188 : vector<8x128xf32>
    %190 = math.tanh %184 : vector<8x128xf32>
    %191 = vector.extract_strided_slice %189 {offsets = [0, 0], sizes = [8, 32], strides = [1, 1]} : vector<8x128xf32> to vector<8x32xf32>
    %192 = vector.extract_strided_slice %189 {offsets = [0, 32], sizes = [8, 32], strides = [1, 1]} : vector<8x128xf32> to vector<8x32xf32>
    %193 = vector.extract_strided_slice %190 {offsets = [0, 64], sizes = [8, 32], strides = [1, 1]} : vector<8x128xf32> to vector<8x32xf32>
    %194 = vector.extract_strided_slice %189 {offsets = [0, 96], sizes = [8, 32], strides = [1, 1]} : vector<8x128xf32> to vector<8x32xf32>
    %195 = arith.mulf %192, %156 : vector<8x32xf32>
    %196 = arith.mulf %191, %193 : vector<8x32xf32>
    %197 = arith.addf %195, %196 : vector<8x32xf32>
    %198 = math.tanh %197 : vector<8x32xf32>
    %199 = arith.mulf %194, %198 : vector<8x32xf32>
    %200 = arith.truncf %199 : vector<8x32xf32> to vector<8x32xbf16>
    %cst_33 = arith.constant dense<0.000000e+00> : vector<8x128xf32>
    %201 = tpu.matmul %200, %4, %cst_33 {dimension_numbers = #tpu.dot_dimension_numbers<[1], [0], [0], [1], [0, 0, 1, 1], [], []>} : vector<8x32xbf16>, vector<32x128xbf16>, vector<8x128xf32> -> vector<8x128xf32>
    %202 = arith.truncf %180 : vector<8x32xf32> to vector<8x32xbf16>
    %cst_34 = arith.constant dense<0.000000e+00> : vector<8x128xf32>
    %203 = tpu.matmul %202, %5, %cst_34 {dimension_numbers = #tpu.dot_dimension_numbers<[1], [0], [0], [1], [0, 0, 1, 1], [], []>} : vector<8x32xbf16>, vector<32x128xbf16>, vector<8x128xf32> -> vector<8x128xf32>
    %204 = arith.addf %201, %203 : vector<8x128xf32>
    %205 = vector.broadcast %8 : vector<1x128xf32> to vector<8x128xf32>
    %206 = arith.addf %204, %205 : vector<8x128xf32>
    %207 = arith.negf %206 : vector<8x128xf32>
    %208 = math.exp %207 : vector<8x128xf32>
    %cst_35 = arith.constant 1.000000e+00 : f32
    %209 = vector.broadcast %cst_35 : f32 to vector<8x128xf32>
    %210 = arith.addf %209, %208 : vector<8x128xf32>
    %211 = arith.divf %209, %210 : vector<8x128xf32>
    %212 = math.tanh %206 : vector<8x128xf32>
    %213 = vector.extract_strided_slice %211 {offsets = [0, 0], sizes = [8, 32], strides = [1, 1]} : vector<8x128xf32> to vector<8x32xf32>
    %214 = vector.extract_strided_slice %211 {offsets = [0, 32], sizes = [8, 32], strides = [1, 1]} : vector<8x128xf32> to vector<8x32xf32>
    %215 = vector.extract_strided_slice %212 {offsets = [0, 64], sizes = [8, 32], strides = [1, 1]} : vector<8x128xf32> to vector<8x32xf32>
    %216 = vector.extract_strided_slice %211 {offsets = [0, 96], sizes = [8, 32], strides = [1, 1]} : vector<8x128xf32> to vector<8x32xf32>
    %217 = arith.mulf %214, %178 : vector<8x32xf32>
    %218 = arith.mulf %213, %215 : vector<8x32xf32>
    %219 = arith.addf %217, %218 : vector<8x32xf32>
    %220 = math.tanh %219 : vector<8x32xf32>
    %221 = arith.mulf %216, %220 : vector<8x32xf32>
    %222 = vector.extract_strided_slice %12 {offsets = [40, 0], sizes = [8, 128], strides = [1, 1]} : vector<64x128xf32> to vector<8x128xf32>
    %223 = arith.truncf %199 : vector<8x32xf32> to vector<8x32xbf16>
    %cst_36 = arith.constant dense<0.000000e+00> : vector<8x128xf32>
    %224 = tpu.matmul %223, %2, %cst_36 {dimension_numbers = #tpu.dot_dimension_numbers<[1], [0], [0], [1], [0, 0, 1, 1], [], []>} : vector<8x32xbf16>, vector<32x128xbf16>, vector<8x128xf32> -> vector<8x128xf32>
    %225 = arith.addf %222, %224 : vector<8x128xf32>
    %226 = arith.negf %225 : vector<8x128xf32>
    %227 = math.exp %226 : vector<8x128xf32>
    %cst_37 = arith.constant 1.000000e+00 : f32
    %228 = vector.broadcast %cst_37 : f32 to vector<8x128xf32>
    %229 = arith.addf %228, %227 : vector<8x128xf32>
    %230 = arith.divf %228, %229 : vector<8x128xf32>
    %231 = math.tanh %225 : vector<8x128xf32>
    %232 = vector.extract_strided_slice %230 {offsets = [0, 0], sizes = [8, 32], strides = [1, 1]} : vector<8x128xf32> to vector<8x32xf32>
    %233 = vector.extract_strided_slice %230 {offsets = [0, 32], sizes = [8, 32], strides = [1, 1]} : vector<8x128xf32> to vector<8x32xf32>
    %234 = vector.extract_strided_slice %231 {offsets = [0, 64], sizes = [8, 32], strides = [1, 1]} : vector<8x128xf32> to vector<8x32xf32>
    %235 = vector.extract_strided_slice %230 {offsets = [0, 96], sizes = [8, 32], strides = [1, 1]} : vector<8x128xf32> to vector<8x32xf32>
    %236 = arith.mulf %233, %197 : vector<8x32xf32>
    %237 = arith.mulf %232, %234 : vector<8x32xf32>
    %238 = arith.addf %236, %237 : vector<8x32xf32>
    %239 = math.tanh %238 : vector<8x32xf32>
    %240 = arith.mulf %235, %239 : vector<8x32xf32>
    %241 = arith.truncf %240 : vector<8x32xf32> to vector<8x32xbf16>
    %cst_38 = arith.constant dense<0.000000e+00> : vector<8x128xf32>
    %242 = tpu.matmul %241, %4, %cst_38 {dimension_numbers = #tpu.dot_dimension_numbers<[1], [0], [0], [1], [0, 0, 1, 1], [], []>} : vector<8x32xbf16>, vector<32x128xbf16>, vector<8x128xf32> -> vector<8x128xf32>
    %243 = arith.truncf %221 : vector<8x32xf32> to vector<8x32xbf16>
    %cst_39 = arith.constant dense<0.000000e+00> : vector<8x128xf32>
    %244 = tpu.matmul %243, %5, %cst_39 {dimension_numbers = #tpu.dot_dimension_numbers<[1], [0], [0], [1], [0, 0, 1, 1], [], []>} : vector<8x32xbf16>, vector<32x128xbf16>, vector<8x128xf32> -> vector<8x128xf32>
    %245 = arith.addf %242, %244 : vector<8x128xf32>
    %246 = vector.broadcast %8 : vector<1x128xf32> to vector<8x128xf32>
    %247 = arith.addf %245, %246 : vector<8x128xf32>
    %248 = arith.negf %247 : vector<8x128xf32>
    %249 = math.exp %248 : vector<8x128xf32>
    %cst_40 = arith.constant 1.000000e+00 : f32
    %250 = vector.broadcast %cst_40 : f32 to vector<8x128xf32>
    %251 = arith.addf %250, %249 : vector<8x128xf32>
    %252 = arith.divf %250, %251 : vector<8x128xf32>
    %253 = math.tanh %247 : vector<8x128xf32>
    %254 = vector.extract_strided_slice %252 {offsets = [0, 0], sizes = [8, 32], strides = [1, 1]} : vector<8x128xf32> to vector<8x32xf32>
    %255 = vector.extract_strided_slice %252 {offsets = [0, 32], sizes = [8, 32], strides = [1, 1]} : vector<8x128xf32> to vector<8x32xf32>
    %256 = vector.extract_strided_slice %253 {offsets = [0, 64], sizes = [8, 32], strides = [1, 1]} : vector<8x128xf32> to vector<8x32xf32>
    %257 = vector.extract_strided_slice %252 {offsets = [0, 96], sizes = [8, 32], strides = [1, 1]} : vector<8x128xf32> to vector<8x32xf32>
    %258 = arith.mulf %255, %219 : vector<8x32xf32>
    %259 = arith.mulf %254, %256 : vector<8x32xf32>
    %260 = arith.addf %258, %259 : vector<8x32xf32>
    %261 = math.tanh %260 : vector<8x32xf32>
    %262 = arith.mulf %257, %261 : vector<8x32xf32>
    %263 = vector.extract_strided_slice %12 {offsets = [48, 0], sizes = [8, 128], strides = [1, 1]} : vector<64x128xf32> to vector<8x128xf32>
    %264 = arith.truncf %240 : vector<8x32xf32> to vector<8x32xbf16>
    %cst_41 = arith.constant dense<0.000000e+00> : vector<8x128xf32>
    %265 = tpu.matmul %264, %2, %cst_41 {dimension_numbers = #tpu.dot_dimension_numbers<[1], [0], [0], [1], [0, 0, 1, 1], [], []>} : vector<8x32xbf16>, vector<32x128xbf16>, vector<8x128xf32> -> vector<8x128xf32>
    %266 = arith.addf %263, %265 : vector<8x128xf32>
    %267 = arith.negf %266 : vector<8x128xf32>
    %268 = math.exp %267 : vector<8x128xf32>
    %cst_42 = arith.constant 1.000000e+00 : f32
    %269 = vector.broadcast %cst_42 : f32 to vector<8x128xf32>
    %270 = arith.addf %269, %268 : vector<8x128xf32>
    %271 = arith.divf %269, %270 : vector<8x128xf32>
    %272 = math.tanh %266 : vector<8x128xf32>
    %273 = vector.extract_strided_slice %271 {offsets = [0, 0], sizes = [8, 32], strides = [1, 1]} : vector<8x128xf32> to vector<8x32xf32>
    %274 = vector.extract_strided_slice %271 {offsets = [0, 32], sizes = [8, 32], strides = [1, 1]} : vector<8x128xf32> to vector<8x32xf32>
    %275 = vector.extract_strided_slice %272 {offsets = [0, 64], sizes = [8, 32], strides = [1, 1]} : vector<8x128xf32> to vector<8x32xf32>
    %276 = vector.extract_strided_slice %271 {offsets = [0, 96], sizes = [8, 32], strides = [1, 1]} : vector<8x128xf32> to vector<8x32xf32>
    %277 = arith.mulf %274, %238 : vector<8x32xf32>
    %278 = arith.mulf %273, %275 : vector<8x32xf32>
    %279 = arith.addf %277, %278 : vector<8x32xf32>
    %280 = math.tanh %279 : vector<8x32xf32>
    %281 = arith.mulf %276, %280 : vector<8x32xf32>
    %282 = arith.truncf %281 : vector<8x32xf32> to vector<8x32xbf16>
    %cst_43 = arith.constant dense<0.000000e+00> : vector<8x128xf32>
    %283 = tpu.matmul %282, %4, %cst_43 {dimension_numbers = #tpu.dot_dimension_numbers<[1], [0], [0], [1], [0, 0, 1, 1], [], []>} : vector<8x32xbf16>, vector<32x128xbf16>, vector<8x128xf32> -> vector<8x128xf32>
    %284 = arith.truncf %262 : vector<8x32xf32> to vector<8x32xbf16>
    %cst_44 = arith.constant dense<0.000000e+00> : vector<8x128xf32>
    %285 = tpu.matmul %284, %5, %cst_44 {dimension_numbers = #tpu.dot_dimension_numbers<[1], [0], [0], [1], [0, 0, 1, 1], [], []>} : vector<8x32xbf16>, vector<32x128xbf16>, vector<8x128xf32> -> vector<8x128xf32>
    %286 = arith.addf %283, %285 : vector<8x128xf32>
    %287 = vector.broadcast %8 : vector<1x128xf32> to vector<8x128xf32>
    %288 = arith.addf %286, %287 : vector<8x128xf32>
    %289 = arith.negf %288 : vector<8x128xf32>
    %290 = math.exp %289 : vector<8x128xf32>
    %cst_45 = arith.constant 1.000000e+00 : f32
    %291 = vector.broadcast %cst_45 : f32 to vector<8x128xf32>
    %292 = arith.addf %291, %290 : vector<8x128xf32>
    %293 = arith.divf %291, %292 : vector<8x128xf32>
    %294 = math.tanh %288 : vector<8x128xf32>
    %295 = vector.extract_strided_slice %293 {offsets = [0, 0], sizes = [8, 32], strides = [1, 1]} : vector<8x128xf32> to vector<8x32xf32>
    %296 = vector.extract_strided_slice %293 {offsets = [0, 32], sizes = [8, 32], strides = [1, 1]} : vector<8x128xf32> to vector<8x32xf32>
    %297 = vector.extract_strided_slice %294 {offsets = [0, 64], sizes = [8, 32], strides = [1, 1]} : vector<8x128xf32> to vector<8x32xf32>
    %298 = vector.extract_strided_slice %293 {offsets = [0, 96], sizes = [8, 32], strides = [1, 1]} : vector<8x128xf32> to vector<8x32xf32>
    %299 = arith.mulf %296, %260 : vector<8x32xf32>
    %300 = arith.mulf %295, %297 : vector<8x32xf32>
    %301 = arith.addf %299, %300 : vector<8x32xf32>
    %302 = math.tanh %301 : vector<8x32xf32>
    %303 = arith.mulf %298, %302 : vector<8x32xf32>
    %304 = vector.extract_strided_slice %12 {offsets = [56, 0], sizes = [8, 128], strides = [1, 1]} : vector<64x128xf32> to vector<8x128xf32>
    %305 = arith.truncf %281 : vector<8x32xf32> to vector<8x32xbf16>
    %cst_46 = arith.constant dense<0.000000e+00> : vector<8x128xf32>
    %306 = tpu.matmul %305, %2, %cst_46 {dimension_numbers = #tpu.dot_dimension_numbers<[1], [0], [0], [1], [0, 0, 1, 1], [], []>} : vector<8x32xbf16>, vector<32x128xbf16>, vector<8x128xf32> -> vector<8x128xf32>
    %307 = arith.addf %304, %306 : vector<8x128xf32>
    %308 = arith.negf %307 : vector<8x128xf32>
    %309 = math.exp %308 : vector<8x128xf32>
    %cst_47 = arith.constant 1.000000e+00 : f32
    %310 = vector.broadcast %cst_47 : f32 to vector<8x128xf32>
    %311 = arith.addf %310, %309 : vector<8x128xf32>
    %312 = arith.divf %310, %311 : vector<8x128xf32>
    %313 = math.tanh %307 : vector<8x128xf32>
    %314 = vector.extract_strided_slice %312 {offsets = [0, 0], sizes = [8, 32], strides = [1, 1]} : vector<8x128xf32> to vector<8x32xf32>
    %315 = vector.extract_strided_slice %312 {offsets = [0, 32], sizes = [8, 32], strides = [1, 1]} : vector<8x128xf32> to vector<8x32xf32>
    %316 = vector.extract_strided_slice %313 {offsets = [0, 64], sizes = [8, 32], strides = [1, 1]} : vector<8x128xf32> to vector<8x32xf32>
    %317 = vector.extract_strided_slice %312 {offsets = [0, 96], sizes = [8, 32], strides = [1, 1]} : vector<8x128xf32> to vector<8x32xf32>
    %318 = arith.mulf %315, %279 : vector<8x32xf32>
    %319 = arith.mulf %314, %316 : vector<8x32xf32>
    %320 = arith.addf %318, %319 : vector<8x32xf32>
    %321 = math.tanh %320 : vector<8x32xf32>
    %322 = arith.mulf %317, %321 : vector<8x32xf32>
    %323 = arith.truncf %322 : vector<8x32xf32> to vector<8x32xbf16>
    %cst_48 = arith.constant dense<0.000000e+00> : vector<8x128xf32>
    %324 = tpu.matmul %323, %4, %cst_48 {dimension_numbers = #tpu.dot_dimension_numbers<[1], [0], [0], [1], [0, 0, 1, 1], [], []>} : vector<8x32xbf16>, vector<32x128xbf16>, vector<8x128xf32> -> vector<8x128xf32>
    %325 = arith.truncf %303 : vector<8x32xf32> to vector<8x32xbf16>
    %cst_49 = arith.constant dense<0.000000e+00> : vector<8x128xf32>
    %326 = tpu.matmul %325, %5, %cst_49 {dimension_numbers = #tpu.dot_dimension_numbers<[1], [0], [0], [1], [0, 0, 1, 1], [], []>} : vector<8x32xbf16>, vector<32x128xbf16>, vector<8x128xf32> -> vector<8x128xf32>
    %327 = arith.addf %324, %326 : vector<8x128xf32>
    %328 = vector.broadcast %8 : vector<1x128xf32> to vector<8x128xf32>
    %329 = arith.addf %327, %328 : vector<8x128xf32>
    %330 = arith.negf %329 : vector<8x128xf32>
    %331 = math.exp %330 : vector<8x128xf32>
    %cst_50 = arith.constant 1.000000e+00 : f32
    %332 = vector.broadcast %cst_50 : f32 to vector<8x128xf32>
    %333 = arith.addf %332, %331 : vector<8x128xf32>
    %334 = arith.divf %332, %333 : vector<8x128xf32>
    %335 = math.tanh %329 : vector<8x128xf32>
    %336 = vector.extract_strided_slice %334 {offsets = [0, 0], sizes = [8, 32], strides = [1, 1]} : vector<8x128xf32> to vector<8x32xf32>
    %337 = vector.extract_strided_slice %334 {offsets = [0, 32], sizes = [8, 32], strides = [1, 1]} : vector<8x128xf32> to vector<8x32xf32>
    %338 = vector.extract_strided_slice %335 {offsets = [0, 64], sizes = [8, 32], strides = [1, 1]} : vector<8x128xf32> to vector<8x32xf32>
    %339 = vector.extract_strided_slice %334 {offsets = [0, 96], sizes = [8, 32], strides = [1, 1]} : vector<8x128xf32> to vector<8x32xf32>
    %340 = arith.mulf %337, %301 : vector<8x32xf32>
    %341 = arith.mulf %336, %338 : vector<8x32xf32>
    %342 = arith.addf %340, %341 : vector<8x32xf32>
    %343 = math.tanh %342 : vector<8x32xf32>
    %344 = arith.mulf %339, %343 : vector<8x32xf32>
    %c0_51 = arith.constant 0 : index
    %c0_52 = arith.constant 0 : index
    %345 = vector.load %arg8[%c0_51, %c0_52] : memref<4x256xf32, #tpu.memory_space<vmem>>, vector<4x256xf32>
    %346 = arith.truncf %344 : vector<8x32xf32> to vector<8x32xbf16>
    %c0_53 = arith.constant 0 : index
    %c0_54 = arith.constant 0 : index
    %347 = vector.load %arg4[%c0_53, %c0_54] : memref<32x256xbf16, #tpu.memory_space<vmem>>, vector<32x256xbf16>
    %cst_55 = arith.constant dense<0.000000e+00> : vector<8x256xf32>
    %348 = tpu.matmul %346, %347, %cst_55 {dimension_numbers = #tpu.dot_dimension_numbers<[1], [0], [0], [1], [0, 0, 1, 1], [], []>} : vector<8x32xbf16>, vector<32x256xbf16>, vector<8x256xf32> -> vector<8x256xf32>
    %349 = vector.extract_strided_slice %345 {offsets = [0, 0], sizes = [1, 256], strides = [1, 1]} : vector<4x256xf32> to vector<1x256xf32>
    %350 = vector.broadcast %349 : vector<1x256xf32> to vector<8x256xf32>
    %351 = arith.addf %348, %350 : vector<8x256xf32>
    %352 = arith.truncf %351 : vector<8x256xf32> to vector<8x256xbf16>
    %c0_56 = arith.constant 0 : index
    %c0_57 = arith.constant 0 : index
    %353 = vector.load %arg5[%c0_56, %c0_57] : memref<256x128xbf16, #tpu.memory_space<vmem>>, vector<256x128xbf16>
    %cst_58 = arith.constant dense<0.000000e+00> : vector<8x128xf32>
    %354 = tpu.matmul %352, %353, %cst_58 {dimension_numbers = #tpu.dot_dimension_numbers<[1], [0], [0], [1], [0, 0, 1, 1], [], []>} : vector<8x256xbf16>, vector<256x128xbf16>, vector<8x128xf32> -> vector<8x128xf32>
    %355 = vector.extract_strided_slice %345 {offsets = [1, 0], sizes = [1, 128], strides = [1, 1]} : vector<4x256xf32> to vector<1x128xf32>
    %356 = vector.broadcast %355 : vector<1x128xf32> to vector<8x128xf32>
    %357 = arith.addf %354, %356 : vector<8x128xf32>
    %cst_59 = arith.constant 0.000000e+00 : f32
    %358 = vector.broadcast %cst_59 : f32 to vector<8x128xf32>
    %359 = arith.maximumf %357, %358 : vector<8x128xf32>
    %360 = arith.truncf %359 : vector<8x128xf32> to vector<8x128xbf16>
    %c0_60 = arith.constant 0 : index
    %c0_61 = arith.constant 0 : index
    %361 = vector.load %arg6[%c0_60, %c0_61] : memref<128x32xbf16, #tpu.memory_space<vmem>>, vector<128x32xbf16>
    %cst_62 = arith.constant dense<0.000000e+00> : vector<8x32xf32>
    %362 = tpu.matmul %360, %361, %cst_62 {dimension_numbers = #tpu.dot_dimension_numbers<[1], [0], [0], [1], [0, 0, 1, 1], [], []>} : vector<8x128xbf16>, vector<128x32xbf16>, vector<8x32xf32> -> vector<8x32xf32>
    %363 = vector.extract_strided_slice %345 {offsets = [2, 0], sizes = [1, 32], strides = [1, 1]} : vector<4x256xf32> to vector<1x32xf32>
    %364 = vector.broadcast %363 : vector<1x32xf32> to vector<8x32xf32>
    %365 = arith.addf %362, %364 : vector<8x32xf32>
    %cst_63 = arith.constant 0.000000e+00 : f32
    %366 = vector.broadcast %cst_63 : f32 to vector<8x32xf32>
    %367 = arith.maximumf %365, %366 : vector<8x32xf32>
    %368 = arith.truncf %367 : vector<8x32xf32> to vector<8x32xbf16>
    %c0_64 = arith.constant 0 : index
    %c0_65 = arith.constant 0 : index
    %369 = vector.load %arg7[%c0_64, %c0_65] : memref<32x128xbf16, #tpu.memory_space<vmem>>, vector<32x128xbf16>
    %cst_66 = arith.constant dense<0.000000e+00> : vector<8x128xf32>
    %370 = tpu.matmul %368, %369, %cst_66 {dimension_numbers = #tpu.dot_dimension_numbers<[1], [0], [0], [1], [0, 0, 1, 1], [], []>} : vector<8x32xbf16>, vector<32x128xbf16>, vector<8x128xf32> -> vector<8x128xf32>
    %371 = vector.extract_strided_slice %345 {offsets = [3, 0], sizes = [1, 128], strides = [1, 1]} : vector<4x256xf32> to vector<1x128xf32>
    %372 = vector.broadcast %371 : vector<1x128xf32> to vector<8x128xf32>
    %373 = arith.addf %370, %372 : vector<8x128xf32>
    %cst_67 = arith.constant 0.000000e+00 : f32
    %374 = vector.broadcast %cst_67 : f32 to vector<8x128xf32>
    %375 = arith.maximumf %373, %374 : vector<8x128xf32>
    %c0_68 = arith.constant 0 : index
    %c0_69 = arith.constant 0 : index
    %376 = vector.load %arg9[%c0_68, %c0_69] : memref<8x128xf32, #tpu.memory_space<vmem>>, vector<8x128xf32>
    tpu.vector_store %arg9[%c0_68, %c0_69], %375 {strides = array<i32>} : memref<8x128xf32, #tpu.memory_space<vmem>>, vector<8x128xf32>,
    return
  }
}

</mosaic_0001>

<bundles_post_ra>
// kernel: lst_model_ann_forward.1
= control target key start
LH: loop header
LB: loop body
LE: loop exit
PB: predicated region body
PF: predicated region fallthrough
CT: control target
= control target key end

     0   :  { %14 = vsyncpa [#allocation3], 0  ;;  %s2766_s30 = smov [#allocation2]   ;;  %s3360_s0 = inlined_call_operand.vmem [shape: bf16[64,16], index: 0, kind: input, shape index: {}]   ;;  %s3361_s1 = inlined_call_operand.vmem [shape: bf16[48,128], index: 1, kind: input, shape index: {}]   ;;  %s3362_s2 = inlined_call_operand.vmem [shape: bf16[64,128], index: 2, kind: input, shape index: {}]   ;;  %s3363_s3 = inlined_call_operand.vmem [shape: f32[2,128], index: 3, kind: input, shape index: {}]   ;;  %s3364_s4 = inlined_call_operand.vmem [shape: bf16[32,256], index: 4, kind: input, shape index: {}]   ;;  %s3365_s5 = inlined_call_operand.vmem [shape: bf16[256,128], index: 5, kind: input, shape index: {}]   ;;  %s3366_s6 = inlined_call_operand.vmem [shape: bf16[128,32], index: 6, kind: input, shape index: {}]   ;;  %s3367_s7 = inlined_call_operand.vmem [shape: bf16[32,128], index: 7, kind: input, shape index: {}]   ;;  %s3368_s8 = inlined_call_operand.hbm [shape: f32[4,256], index: 8, kind: input, shape index: {}]   ;;  %s3369_s9 = inlined_call_operand.vmem [shape: f32[8,128], index: 9, kind: output, shape index: {}]  }
   0x1   :  { %s37_s10 = sshll.u32 %s2766_s30, 4  ;;  %s2742_s13 = scalar_lea.hbm %s3368_s8, 128  ;;  %s38_s10 = int_to_ptr.vmem [resolvable:$true] %s37_s10 }
   0x2   :  { %p2743_p0 = scmp.ne.s32.totalorder %s3368_s8, %s2742_s13  ;;  %p2746_p1 = scmp.lt.u32.totalorder %s2742_s13, %s3368_s8 }
   0x4   :  { %p2748_p2 = pnand %p2746_p1, %p2743_p0 }
   0x6   :  { %2751 = shalt.err (!%p2748_p2)
}
   0x7   :  { %s2752_s18 = scalar_lea.vmem %s38_s10, 128  ;;  %p2757_p4 = scmp.lt.s32.totalorder %s38_s10, %s38_s10 }
   0x8   :  { %p2753_p3 = scmp.ne.s32.totalorder %s38_s10, %s2752_s18  ;;  %p2758_p5 = scmp.lt.s32.totalorder %s2752_s18, %s2752_s18 }
   0xa   :  { %p2759_p6 = por %p2758_p5, %p2757_p4 }
   0xc   :  { %p2760_p7 = pnand %p2759_p6, %p2753_p3 }
   0xe   :  { %2763 = shalt.err (!%p2760_p7)
}
   0xf   :  { %40 = dma.hbm_to_vmem [thread:$0]  %s3368_s8, 128, %s38_s10, [#allocation3]  }
  0x10   :  { %2764 = dma.done.wait [#allocation3], 128  }
  0x11   :  { %2765 = vsyncadd [#allocation3], 4294967168  ;;  %v2767_v0 = vmov 0.0   ;;  %vm2768_vm0 = vmmov 0   ;;  %v2565_v1 = vld [vmem:[%s3361_s1] sm:$0xff]   ;;  %v2843_v2 = vld [vmem:[%s3361_s1 + $0x8] sm:$0xff]   ;;  %v68_v7 = vlaneseq }
  0x12   :  { %2339 = vmatprep.subr.bf16.mxu1 %v2767_v0  ;;  %2343 = vmatprep.mubr.msk.bf16.mxu1 %vm2768_vm0, %v2767_v0  ;;  %vm98_vm1 = vcmask 130048   ;;  %v2567_v3 = vld [vmem:[%s3360_s0] sm:$0xff]   ;;  %v2568_v4 = vld [vmem:[%s3360_s0 + $0x8] sm:$0xff]   ;;  %v2857_v5 = vld [vmem:[%s3361_s1 + $0x10] sm:$0xff]   ;;  %v2769_v6 = vmov 0   ;;  %s2771_s11 = smov 32  }
  0x13   :  { %2329 = vmatprep.subr.bf16.mxu0 %v2565_v1  ;;  %2340 = vmatpush3.bf16.msra.mxu1 %v2843_v2  ;;  %v2866_v8 = vshrl.u32 %v68_v7, 7  ;;  %v2874_v10 = vld [vmem:[%s3363_s3] sm:$0x3]  ;;  %s2770_s3 = smov 64   ;;  %v2895_v32 = vld [vmem:[%s3362_s2 + $0x10] sm:$0xff]   ;;  %v2574_v35 = vld [vmem:[%s3360_s0 + $0x18] sm:$0xff]  }
  0x14   :  { %2330 = vmatpush3.bf16.msra.mxu0 %v2565_v1  ;;  %2331 = vmatprep.mubr.msk.bf16.mxu0 %vm98_vm1, %v2567_v3  ;;  %v2900_v33 = vld [vmem:[%s3362_s2] sm:$0xff]   ;;  %v2572_v34 = vld [vmem:[%s3360_s0 + $0x10] sm:$0xff]   ;;  %v2913_v36 = vld [vmem:[%s3362_s2 + $0x18] sm:$0xff]   ;;  %vm188_vm2 = vcmask 261120  }
  0x15   :  { %2341 = vmatprep.subr.bf16.mxu1 %v2767_v0  ;;  %2355 = vmatprep.subr.bf16.mxu0 %v2767_v0  ;;  %v2869_v9 = vsub.s32 0, %v2866_v8  ;;  %v2918_v37 = vld [vmem:[%s3362_s2 + $0x8] sm:$0xff]   ;;  %v370_v51 = vsub.s32 1, %v2866_v8 }
  0x17   :  { %2332 = vmatmul.mubr.msk.bf16.vlgmr.msra.gmra.mrb[0].mxu0 %vm98_vm1, %v2568_v4  ;;  %2342 = vmatpush3.bf16.msra.mxu1 %v2857_v5  ;;  %v2878_v11 = vrot.slane %v2874_v10, %v2869_v9  ;;  %v2967_v53 = vrot.slane %v2874_v10, %v370_v51 }
  0x18   :  { %2347 = vmatprep.subr.bf16.mxu1 %v2767_v0  ;;  %2356 = vmatpush3.bf16.msra.mxu0 %v2900_v33 }
  0x19   :  { %2335 = vmatprep.mubr.msk.bf16.mxu0 %vm98_vm1, %v2572_v34  ;;  %2357 = vmatprep.subr.bf16.mxu0 %v2767_v0 }
  0x1a   :  { %2344 = vmatmul.mubr.bf16.vlgmr.msra.gmra.mrb[0].mxu1 %v2769_v6 }
  0x1b   :  { %2351 = vmatprep.mubr.msk.bf16.mxu1 %vm2768_vm0, %v2767_v0  ;;  %2348 = vmatpush3.bf16.msra.mxu1 %v2895_v32 }
  0x1c   :  { %2349 = vmatprep.subr.bf16.mxu1 %v2767_v0  ;;  %2358 = vmatpush3.bf16.msra.mxu0 %v2918_v37 }
  0x1d   :  { %2371 = vmatprep.subr.bf16.mxu0 %v2767_v0 }
  0x1f   :  { %2336 = vmatmul.mubr.msk.bf16.gmra.mrb[4].mxu0 %vm98_vm1, %v2574_v35  ;;  %2350 = vmatpush3.bf16.msra.mxu1 %v2913_v36 }
  0x20   :  { %2359 = vmatprep.mubr.msk.bf16.mxu0 %vm2768_vm0, %v2767_v0  ;;  %2363 = vmatprep.subr.bf16.mxu1 %v2767_v0 }
  0x22   :  { %2352 = vmatmul.mubr.bf16.vlgmr.msra.gmra.mrb[4].mxu1 %v2769_v6 }
  0x23   :  { %2364 = vmatpush3.bf16.msra.mxu1 %v2843_v2  ;;  %2367 = vmatprep.mubr.msk.bf16.mxu1 %vm2768_vm0, %v2767_v0 }
  0x24   :  { %2365 = vmatprep.subr.bf16.mxu1 %v2767_v0 }
  0x27   :  { %2366 = vmatpush3.bf16.msra.mxu1 %v2857_v5 }
  0x28   :  { %2379 = vmatprep.subr.bf16.mxu1 %v2767_v0 }
  0xea   :  { %v2880_v12 = vpop.f32.mrb[0].mxu0 }
  0xeb   :  { %v145_v13 = vpop.f32.mrb[1].mxu0 }
  0xec   :  { %v146_v14 = vadd.f32 %v145_v13, %v2878_v11  ;;  %v2883_v15 = vpop.f32.mrb[2].mxu0 }
  0xed   :  { %v2885_v16 = vpop.f32.mrb[3].mxu0  ;;  %v226_v17 = vpop.f32.mrb[0].mxu1 }
  0xee   :  { %v232_v18 = vadd.f32 %v226_v17, %v146_v14  ;;  %v2345_v19 = vpop.f32.mrb[1].mxu1  ;;  %v149_v52 = vadd.f32 %v2885_v16, %v2878_v11 }
  0xef   :  { %v229_v20 = vpop.f32.mrb[2].mxu1 }
  0xf0   :  { %2608 = vtanh.f32 %v232_v18  ;;  %v2346_v21 = vpop.f32.mrb[3].mxu1  ;;  %v2144_v23 = vmul.f32 -1.442695, %v232_v18 }
  0xf2   :  { %2610 = vpow2.f32 %v2144_v23  ;;  %v2939_v42 = vpop.f32.mrb[4].mxu0 }
  0xf3   :  { %v2941_v43 = vpop.f32.mrb[5].mxu0 }
  0xf4   :  { %v2943_v44 = vpop.f32.mrb[6].mxu0 }
  0xf5   :  { %v2945_v45 = vpop.f32.mrb[7].mxu0  ;;  %v304_v46 = vpop.f32.mrb[4].mxu1 }
  0xf6   :  { %v2353_v47 = vpop.f32.mrb[5].mxu1 }
  0xf7   :  { %v307_v48 = vpop.f32.mrb[6].mxu1 }
  0xf8   :  { %v2354_v49 = vpop.f32.mrb[7].mxu1 }
  0xfa   :  { %v2609_v22 = vpop.eup %2608 }
  0xfb   :  { %242 = vrot.lane.b32.xlu0 %v2609_v22, %s2770_s3 }
  0xfc   :  { %v2611_v24 = vpop.eup %2610 }
  0xfd   :  { %v236_v25 = vadd.f32 1.0, %v2611_v24 }
  0xff   :  { %2612 = vrcp.f32 %v236_v25 }
 0x109   :  { %v2613_v26 = vpop.eup %2612 }
 0x10a   :  { %v240_v29 = vmul.f32 0.0, %v2613_v26 }
 0x16d   :  { %v243_v27 = vpop.permute.xlu0 %242 }
 0x16e   :  { %v245_v28 = vmul.f32 %v2613_v26, %v243_v27 }
 0x170   :  { %247 = vrot.lane.b32.xlu0 %v245_v28, %s2771_s11 }
 0x1e2   :  { %v248_v30 = vpop.permute.xlu0 %247 }
 0x1e3   :  { %v2889_v31 = vadd.f32 %v248_v30, %v240_v29 }
 0x1e5   :  { %2614 = vtanh.f32 %v2889_v31 }
 0x1ef   :  { %v2615_v38 = vpop.eup %2614 }
 0x1f0   :  { %253 = vrot.lane.b32.xlu1 %v2615_v38, %s2770_s3 }
 0x262   :  { %v254_v39 = vpop.permute.xlu1 %253 }
 0x263   :  { %v256_v40 = vmul.f32 %v2613_v26, %v254_v39 }
 0x265   :  { %v257_v41 = vpack.c.bf16 %v256_v40, %v256_v40 }
 0x267   :  { %311 = vrot.lane.b32.xlu1 %v257_v41, %s2771_s11 }
 0x2d9   :  { %v312_v50 = vpop.permute.xlu1 %311 }
 0x2da   :  { %2360 = vmatmul.mubr.msk.bf16.vlgmr.msra.gmra.mrb[8].mxu0 %vm188_vm2, %v312_v50  ;;  %2368 = vmatmul.mubr.msk.bf16.vlgmr.msra.gmra.mrb[8].mxu1 %vm188_vm2, %v312_v50 }
 0x2db   :  { %2380 = vmatpush3.bf16.msra.mxu1 %v2900_v33  ;;  %2372 = vmatpush3.bf16.msra.mxu0 %v2895_v32 }
 0x2dc   :  { %2381 = vmatprep.subr.bf16.mxu1 %v2767_v0  ;;  %2373 = vmatprep.subr.bf16.mxu0 %v2767_v0 }
 0x2dd   :  { %2383 = vmatprep.mubr.msk.bf16.mxu1 %vm2768_vm0, %v2767_v0  ;;  %2375 = vmatprep.mubr.msk.bf16.mxu0 %vm2768_vm0, %v2767_v0 }
 0x2df   :  { %2382 = vmatpush3.bf16.msra.mxu1 %v2918_v37  ;;  %2374 = vmatpush3.bf16.msra.mxu0 %v2913_v36 }
 0x2e0   :  { %2387 = vmatprep.subr.bf16.mxu0 %v2767_v0  ;;  %2395 = vmatprep.subr.bf16.mxu1 %v2767_v0 }
 0x3ad   :  { %v362_v54 = vpop.f32.mrb[8].mxu0  ;;  %v431_v55 = vpop.f32.mrb[8].mxu1 }
 0x3ae   :  { %v363_v56 = vadd.f32 %v362_v54, %v304_v46  ;;  %v437_v57 = vadd.f32 %v431_v55, %v149_v52  ;;  %v2361_v58 = vpop.f32.mrb[9].mxu0  ;;  %v2369_v59 = vpop.f32.mrb[9].mxu1 }
 0x3af   :  { %v365_v60 = vpop.f32.mrb[10].mxu0  ;;  %v434_v61 = vpop.f32.mrb[10].mxu1 }
 0x3b0   :  { %v372_v62 = vadd.f32 %v2967_v53, %v363_v56  ;;  %2616 = vtanh.f32 %v437_v57  ;;  %v2362_v63 = vpop.f32.mrb[11].mxu0  ;;  %v2370_v1 = vpop.f32.mrb[11].mxu1  ;;  %v2152_v7 = vmul.f32 -1.442695, %v437_v57  ;;  %v154_v60 = vadd.f32 %v2880_v12, %v2878_v11 }
 0x3b2   :  { %2618 = vtanh.f32 %v372_v62  ;;  %v2150_v10 = vmul.f32 -1.442695, %v372_v62 }
 0x3b3   :  { %2620 = vpow2.f32 %v2152_v7 }
 0x3b4   :  { %2622 = vpow2.f32 %v2150_v10 }
 0x3ba   :  { %v2617_v3 = vpop.eup %2616 }
 0x3bb   :  { %447 = vrot.lane.b32.xlu1 %v2617_v3, %s2770_s3 }
 0x3bc   :  { %v2619_v4 = vpop.eup %2618 }
 0x3bd   :  { %382 = vrot.lane.b32.xlu0 %v2619_v4, %s2770_s3  ;;  %v2621_v13 = vpop.eup %2620 }
 0x3be   :  { %v2623_v14 = vpop.eup %2622  ;;  %v441_v16 = vadd.f32 1.0, %v2621_v13 }
 0x3bf   :  { %v376_v17 = vadd.f32 1.0, %v2623_v14 }
 0x3c0   :  { %2624 = vrcp.f32 %v441_v16 }
 0x3c1   :  { %2626 = vrcp.f32 %v376_v17 }
 0x3ca   :  { %v2625_v18 = vpop.eup %2624 }
 0x3cb   :  { %v2627_v21 = vpop.eup %2626  ;;  %v445_v24 = vmul.f32 %v2625_v18, %v2889_v31 }
 0x3cc   :  { %v380_v27 = vmul.f32 0.0, %v2627_v21 }
 0x42d   :  { %v448_v19 = vpop.permute.xlu1 %447 }
 0x42e   :  { %v450_v20 = vmul.f32 %v2625_v18, %v448_v19 }
 0x42f   :  { %v383_v22 = vpop.permute.xlu0 %382 }
 0x430   :  { %v385_v23 = vmul.f32 %v2627_v21, %v383_v22  ;;  %452 = vrot.lane.b32.xlu1 %v450_v20, %s2771_s11 }
 0x432   :  { %387 = vrot.lane.b32.xlu0 %v385_v23, %s2771_s11 }
 0x4a2   :  { %v453_v25 = vpop.permute.xlu1 %452 }
 0x4a3   :  { %v2975_v26 = vadd.f32 %v453_v25, %v445_v24 }
 0x4a4   :  { %v388_v28 = vpop.permute.xlu0 %387 }
 0x4a5   :  { %2628 = vtanh.f32 %v2975_v26  ;;  %v2978_v29 = vadd.f32 %v388_v28, %v380_v27 }
 0x4a7   :  { %2630 = vtanh.f32 %v2978_v29 }
 0x4af   :  { %v2629_v30 = vpop.eup %2628 }
 0x4b0   :  { %458 = vrot.lane.b32.xlu1 %v2629_v30, %s2770_s3 }
 0x4b1   :  { %v2631_v34 = vpop.eup %2630 }
 0x4b2   :  { %393 = vrot.lane.b32.xlu0 %v2631_v34, %s2770_s3 }
 0x522   :  { %v459_v35 = vpop.permute.xlu1 %458 }
 0x523   :  { %v461_v38 = vmul.f32 %v2625_v18, %v459_v35 }
 0x524   :  { %v394_v31 = vpop.permute.xlu0 %393 }
 0x525   :  { %v462_v39 = vpack.c.bf16 %v461_v38, %v461_v38  ;;  %v396_v40 = vmul.f32 %v2627_v21, %v394_v31 }
 0x527   :  { %v463_v41 = vpack.c.bf16 %v396_v40, %v396_v40  ;;  %511 = vrot.lane.b32.xlu1 %v462_v39, %s2771_s11 }
 0x529   :  { %465 = vrot.lane.b32.xlu0 %v463_v41, %s2771_s11 }
 0x599   :  { %v512_v46 = vpop.permute.xlu1 %511 }
 0x59a   :  { %2384 = vmatmul.mubr.msk.bf16.vlgmr.msra.gmra.mrb[12].mxu1 %vm188_vm2, %v512_v46 }
 0x59b   :  { %v466_v47 = vpop.permute.xlu0 %465  ;;  %2396 = vmatpush3.bf16.msra.mxu1 %v2895_v32  ;;  %2399 = vmatprep.mubr.msk.bf16.mxu1 %vm2768_vm0, %v2767_v0 }
 0x59c   :  { %2376 = vmatmul.mubr.msk.bf16.vlgmr.msra.gmra.mrb[12].mxu0 %vm188_vm2, %v466_v47  ;;  %2397 = vmatprep.subr.bf16.mxu1 %v2767_v0 }
 0x59d   :  { %2388 = vmatpush3.bf16.msra.mxu0 %v2843_v2  ;;  %2391 = vmatprep.mubr.msk.bf16.mxu0 %vm2768_vm0, %v2767_v0 }
 0x59e   :  { %2389 = vmatprep.subr.bf16.mxu0 %v2767_v0 }
 0x59f   :  { %2398 = vmatpush3.bf16.msra.mxu1 %v2913_v36 }
 0x5a0   :  { %2411 = vmatprep.subr.bf16.mxu1 %v2767_v0 }
 0x5a1   :  { %2390 = vmatpush3.bf16.msra.mxu0 %v2857_v5 }
 0x5a2   :  { %2403 = vmatprep.subr.bf16.mxu0 %v2767_v0 }
 0x5a4   :  { %2392 = vmatmul.mubr.msk.bf16.vlgmr.msra.gmra.mrb[16].mxu0 %vm188_vm2, %v512_v46 }
 0x5a5   :  { %2404 = vmatpush3.bf16.msra.mxu0 %v2900_v33  ;;  %2407 = vmatprep.mubr.msk.bf16.mxu0 %vm2768_vm0, %v2767_v0 }
 0x5a6   :  { %2405 = vmatprep.subr.bf16.mxu0 %v2767_v0 }
 0x5a9   :  { %2406 = vmatpush3.bf16.msra.mxu0 %v2918_v37 }
 0x5aa   :  { %2419 = vmatprep.subr.bf16.mxu0 %v2767_v0 }
 0x66d   :  { %v550_v48 = vpop.f32.mrb[12].mxu1 }
 0x66e   :  { %v2385_v49 = vpop.f32.mrb[13].mxu1 }
 0x66f   :  { %v504_v50 = vpop.f32.mrb[12].mxu0  ;;  %v553_v52 = vpop.f32.mrb[14].mxu1 }
 0x670   :  { %v551_v54 = vadd.f32 %v550_v48, %v504_v50  ;;  %v2377_v55 = vpop.f32.mrb[13].mxu0  ;;  %v2386_v56 = vpop.f32.mrb[15].mxu1 }
 0x671   :  { %v507_v57 = vpop.f32.mrb[14].mxu0  ;;  %v157_v55 = vadd.f32 %v2883_v15, %v2878_v11 }
 0x672   :  { %v556_v58 = vadd.f32 %v551_v54, %v2967_v53  ;;  %v2378_v59 = vpop.f32.mrb[15].mxu0 }
 0x674   :  { %2632 = vtanh.f32 %v556_v58  ;;  %v2155_v10 = vmul.f32 -1.442695, %v556_v58 }
 0x677   :  { %v615_v61 = vpop.f32.mrb[16].mxu0 }
 0x678   :  { %v621_v62 = vadd.f32 %v615_v61, %v154_v60  ;;  %v2393_v63 = vpop.f32.mrb[17].mxu0 }
 0x679   :  { %v618_v1 = vpop.f32.mrb[18].mxu0 }
 0x67a   :  { %2634 = vtanh.f32 %v621_v62  ;;  %v2394_v3 = vpop.f32.mrb[19].mxu0  ;;  %v2157_v13 = vmul.f32 -1.442695, %v621_v62 }
 0x67b   :  { %2636 = vpow2.f32 %v2155_v10 }
 0x67c   :  { %2638 = vpow2.f32 %v2157_v13 }
 0x67e   :  { %v2633_v4 = vpop.eup %2632 }
 0x67f   :  { %566 = vrot.lane.b32.xlu0 %v2633_v4, %s2770_s3 }
 0x684   :  { %v2635_v7 = vpop.eup %2634 }
 0x685   :  { %631 = vrot.lane.b32.xlu1 %v2635_v7, %s2770_s3  ;;  %v2637_v14 = vpop.eup %2636 }
 0x686   :  { %v560_v16 = vadd.f32 1.0, %v2637_v14  ;;  %v2639_v17 = vpop.eup %2638 }
 0x687   :  { %v625_v12 = vadd.f32 1.0, %v2639_v17 }
 0x688   :  { %2640 = vrcp.f32 %v560_v16 }
 0x689   :  { %2642 = vrcp.f32 %v625_v12 }
 0x692   :  { %v2641_v18 = vpop.eup %2640 }
 0x693   :  { %v2643_v21 = vpop.eup %2642  ;;  %v564_v24 = vmul.f32 %v2641_v18, %v2978_v29 }
 0x694   :  { %v629_v28 = vmul.f32 %v2643_v21, %v2975_v26 }
 0x6f1   :  { %v567_v19 = vpop.permute.xlu0 %566 }
 0x6f2   :  { %v569_v20 = vmul.f32 %v2641_v18, %v567_v19 }
 0x6f4   :  { %571 = vrot.lane.b32.xlu0 %v569_v20, %s2771_s11 }
 0x6f7   :  { %v632_v22 = vpop.permute.xlu1 %631 }
 0x6f8   :  { %v634_v23 = vmul.f32 %v2643_v21, %v632_v22 }
 0x6fa   :  { %636 = vrot.lane.b32.xlu1 %v634_v23, %s2771_s11 }
 0x766   :  { %v572_v25 = vpop.permute.xlu0 %571 }
 0x767   :  { %v3014_v27 = vadd.f32 %v572_v25, %v564_v24 }
 0x769   :  { %2644 = vtanh.f32 %v3014_v27 }
 0x76c   :  { %v637_v30 = vpop.permute.xlu1 %636 }
 0x76d   :  { %v3018_v34 = vadd.f32 %v637_v30, %v629_v28 }
 0x76f   :  { %2646 = vtanh.f32 %v3018_v34 }
 0x773   :  { %v2645_v35 = vpop.eup %2644 }
 0x774   :  { %577 = vrot.lane.b32.xlu0 %v2645_v35, %s2770_s3 }
 0x779   :  { %v2647_v38 = vpop.eup %2646 }
 0x77a   :  { %642 = vrot.lane.b32.xlu1 %v2647_v38, %s2770_s3 }
 0x7e6   :  { %v578_v31 = vpop.permute.xlu0 %577 }
 0x7e7   :  { %v580_v29 = vmul.f32 %v2641_v18, %v578_v31 }
 0x7e9   :  { %v647_v39 = vpack.c.bf16 %v580_v29, %v580_v29 }
 0x7eb   :  { %649 = vrot.lane.b32.xlu0 %v647_v39, %s2771_s11 }
 0x7ec   :  { %v643_v40 = vpop.permute.xlu1 %642 }
 0x7ed   :  { %v645_v41 = vmul.f32 %v2643_v21, %v643_v40 }
 0x7ef   :  { %v646_v46 = vpack.c.bf16 %v645_v41, %v645_v41 }
 0x7f1   :  { %695 = vrot.lane.b32.xlu1 %v646_v46, %s2771_s11 }
 0x85d   :  { %v650_v26 = vpop.permute.xlu0 %649 }
 0x85e   :  { %2400 = vmatmul.mubr.msk.bf16.vlgmr.msra.gmra.mrb[16].mxu1 %vm188_vm2, %v650_v26 }
 0x85f   :  { %2412 = vmatpush3.bf16.msra.mxu1 %v2843_v2  ;;  %2415 = vmatprep.mubr.msk.bf16.mxu1 %vm2768_vm0, %v2767_v0 }
 0x860   :  { %2413 = vmatprep.subr.bf16.mxu1 %v2767_v0 }
 0x863   :  { %2414 = vmatpush3.bf16.msra.mxu1 %v2857_v5  ;;  %v696_v47 = vpop.permute.xlu1 %695 }
 0x864   :  { %2408 = vmatmul.mubr.msk.bf16.vlgmr.msra.gmra.mrb[20].mxu0 %vm188_vm2, %v696_v47  ;;  %2427 = vmatprep.subr.bf16.mxu1 %v2767_v0 }
 0x865   :  { %2420 = vmatpush3.bf16.msra.mxu0 %v2895_v32  ;;  %2423 = vmatprep.mubr.msk.bf16.mxu0 %vm2768_vm0, %v2767_v0 }
 0x866   :  { %2416 = vmatmul.mubr.msk.bf16.vlgmr.msra.gmra.mrb[20].mxu1 %vm188_vm2, %v696_v47  ;;  %2421 = vmatprep.subr.bf16.mxu0 %v2767_v0 }
 0x867   :  { %2428 = vmatpush3.bf16.msra.mxu1 %v2900_v33  ;;  %2431 = vmatprep.mubr.msk.bf16.mxu1 %vm2768_vm0, %v2767_v0 }
 0x868   :  { %2429 = vmatprep.subr.bf16.mxu1 %v2767_v0 }
 0x869   :  { %2422 = vmatpush3.bf16.msra.mxu0 %v2913_v36 }
 0x86a   :  { %2435 = vmatprep.subr.bf16.mxu0 %v2767_v0 }
 0x86b   :  { %2430 = vmatpush3.bf16.msra.mxu1 %v2918_v37 }
 0x86c   :  { %2443 = vmatprep.subr.bf16.mxu1 %v2767_v0 }
 0x931   :  { %v688_v48 = vpop.f32.mrb[16].mxu1 }
 0x932   :  { %v2401_v49 = vpop.f32.mrb[17].mxu1 }
 0x933   :  { %v691_v50 = vpop.f32.mrb[18].mxu1 }
 0x934   :  { %v2402_v52 = vpop.f32.mrb[19].mxu1 }
 0x937   :  { %v734_v54 = vpop.f32.mrb[20].mxu0 }
 0x938   :  { %v735_v56 = vadd.f32 %v734_v54, %v688_v48  ;;  %v2409_v57 = vpop.f32.mrb[21].mxu0 }
 0x939   :  { %v737_v58 = vpop.f32.mrb[22].mxu0  ;;  %v799_v59 = vpop.f32.mrb[20].mxu1 }
 0x93a   :  { %v740_v60 = vadd.f32 %v735_v56, %v2967_v53  ;;  %v805_v61 = vadd.f32 %v799_v59, %v157_v55  ;;  %v2410_v62 = vpop.f32.mrb[23].mxu0  ;;  %v2417_v63 = vpop.f32.mrb[21].mxu1  ;;  %v162_v59 = vadd.f32 %v2941_v43, %v2878_v11 }
 0x93b   :  { %v802_v1 = vpop.f32.mrb[22].mxu1 }
 0x93c   :  { %2648 = vtanh.f32 %v740_v60  ;;  %v2418_v3 = vpop.f32.mrb[23].mxu1  ;;  %v2160_v15 = vmul.f32 -1.442695, %v740_v60  ;;  %v2162_v10 = vmul.f32 -1.442695, %v805_v61 }
 0x93d   :  { %2650 = vtanh.f32 %v805_v61 }
 0x93e   :  { %2652 = vpow2.f32 %v2160_v15 }
 0x93f   :  { %2654 = vpow2.f32 %v2162_v10 }
 0x946   :  { %v2649_v4 = vpop.eup %2648 }
 0x947   :  { %v2651_v7 = vpop.eup %2650  ;;  %750 = vrot.lane.b32.xlu0 %v2649_v4, %s2770_s3 }
 0x948   :  { %815 = vrot.lane.b32.xlu1 %v2651_v7, %s2770_s3  ;;  %v2653_v13 = vpop.eup %2652 }
 0x949   :  { %v2655_v14 = vpop.eup %2654  ;;  %v744_v16 = vadd.f32 1.0, %v2653_v13 }
 0x94a   :  { %v809_v17 = vadd.f32 1.0, %v2655_v14 }
 0x94b   :  { %2656 = vrcp.f32 %v744_v16 }
 0x94c   :  { %2658 = vrcp.f32 %v809_v17 }
 0x955   :  { %v2657_v12 = vpop.eup %2656 }
 0x956   :  { %v2659_v19 = vpop.eup %2658  ;;  %v748_v23 = vmul.f32 %v2657_v12, %v3014_v27 }
 0x957   :  { %v813_v24 = vmul.f32 %v2659_v19, %v3018_v34 }
 0x9b9   :  { %v751_v18 = vpop.permute.xlu0 %750 }
 0x9ba   :  { %v816_v20 = vpop.permute.xlu1 %815  ;;  %v753_v21 = vmul.f32 %v2657_v12, %v751_v18 }
 0x9bb   :  { %v818_v22 = vmul.f32 %v2659_v19, %v816_v20 }
 0x9bc   :  { %755 = vrot.lane.b32.xlu0 %v753_v21, %s2771_s11 }
 0x9bd   :  { %820 = vrot.lane.b32.xlu1 %v818_v22, %s2771_s11 }
 0xa2e   :  { %v756_v25 = vpop.permute.xlu0 %755 }
 0xa2f   :  { %v821_v28 = vpop.permute.xlu1 %820  ;;  %v3055_v30 = vadd.f32 %v756_v25, %v748_v23 }
 0xa30   :  { %v3057_v35 = vadd.f32 %v821_v28, %v813_v24 }
 0xa31   :  { %2660 = vtanh.f32 %v3055_v30 }
 0xa32   :  { %2662 = vtanh.f32 %v3057_v35 }
 0xa3b   :  { %v2661_v38 = vpop.eup %2660 }
 0xa3c   :  { %v2663_v31 = vpop.eup %2662  ;;  %761 = vrot.lane.b32.xlu0 %v2661_v38, %s2770_s3 }
 0xa3d   :  { %826 = vrot.lane.b32.xlu1 %v2663_v31, %s2770_s3 }
 0xaae   :  { %v762_v29 = vpop.permute.xlu0 %761 }
 0xaaf   :  { %v827_v27 = vpop.permute.xlu1 %826  ;;  %v764_v39 = vmul.f32 %v2657_v12, %v762_v29 }
 0xab0   :  { %v829_v34 = vmul.f32 %v2659_v19, %v827_v27 }
 0xab1   :  { %v831_v40 = vpack.c.bf16 %v764_v39, %v764_v39 }
 0xab2   :  { %v830_v41 = vpack.c.bf16 %v829_v34, %v829_v34 }
 0xab3   :  { %833 = vrot.lane.b32.xlu0 %v831_v40, %s2771_s11 }
 0xab4   :  { %879 = vrot.lane.b32.xlu1 %v830_v41, %s2771_s11 }
 0xb25   :  { %v834_v46 = vpop.permute.xlu0 %833 }
 0xb26   :  { %v880_v26 = vpop.permute.xlu1 %879  ;;  %2424 = vmatmul.mubr.msk.bf16.vlgmr.msra.gmra.mrb[24].mxu0 %vm188_vm2, %v834_v46 }
 0xb27   :  { %2432 = vmatmul.mubr.msk.bf16.vlgmr.msra.gmra.mrb[24].mxu1 %vm188_vm2, %v880_v26  ;;  %2436 = vmatpush3.bf16.msra.mxu0 %v2843_v2 }
 0xb28   :  { %2437 = vmatprep.subr.bf16.mxu0 %v2767_v0  ;;  %2439 = vmatprep.mubr.msk.bf16.mxu0 %vm2768_vm0, %v2767_v0 }
 0xb29   :  { %2444 = vmatpush3.bf16.msra.mxu1 %v2895_v32  ;;  %2447 = vmatprep.mubr.msk.bf16.mxu1 %vm2768_vm0, %v2767_v0 }
 0xb2a   :  { %2445 = vmatprep.subr.bf16.mxu1 %v2767_v0 }
 0xb2b   :  { %2438 = vmatpush3.bf16.msra.mxu0 %v2857_v5 }
 0xb2c   :  { %2451 = vmatprep.subr.bf16.mxu0 %v2767_v0 }
 0xb2d   :  { %2446 = vmatpush3.bf16.msra.mxu1 %v2913_v36 }
 0xb2e   :  { %2440 = vmatmul.mubr.msk.bf16.vlgmr.msra.gmra.mrb[28].mxu0 %vm188_vm2, %v880_v26  ;;  %2459 = vmatprep.subr.bf16.mxu1 %v2767_v0 }
 0xb2f   :  { %2452 = vmatpush3.bf16.msra.mxu0 %v2900_v33  ;;  %2455 = vmatprep.mubr.msk.bf16.mxu0 %vm2768_vm0, %v2767_v0 }
 0xb30   :  { %2453 = vmatprep.subr.bf16.mxu0 %v2767_v0 }
 0xb33   :  { %2454 = vmatpush3.bf16.msra.mxu0 %v2918_v37 }
 0xb34   :  { %2467 = vmatprep.subr.bf16.mxu0 %v2767_v0 }
 0xbf9   :  { %v872_v47 = vpop.f32.mrb[24].mxu0 }
 0xbfa   :  { %v918_v48 = vpop.f32.mrb[24].mxu1  ;;  %v2425_v49 = vpop.f32.mrb[25].mxu0 }
 0xbfb   :  { %v919_v50 = vadd.f32 %v918_v48, %v872_v47  ;;  %v2433_v52 = vpop.f32.mrb[25].mxu1  ;;  %v875_v54 = vpop.f32.mrb[26].mxu0 }
 0xbfc   :  { %v921_v55 = vpop.f32.mrb[26].mxu1  ;;  %v2426_v56 = vpop.f32.mrb[27].mxu0 }
 0xbfd   :  { %v924_v57 = vadd.f32 %v919_v50, %v2967_v53  ;;  %v2434_v58 = vpop.f32.mrb[27].mxu1  ;;  %v165_v50 = vadd.f32 %v2945_v45, %v2878_v11 }
 0xbff   :  { %2664 = vtanh.f32 %v924_v57  ;;  %v2165_v7 = vmul.f32 -1.442695, %v924_v57 }
 0xc01   :  { %v983_v60 = vpop.f32.mrb[28].mxu0 }
 0xc02   :  { %v989_v61 = vadd.f32 %v983_v60, %v162_v59  ;;  %v2441_v62 = vpop.f32.mrb[29].mxu0 }
 0xc03   :  { %v986_v63 = vpop.f32.mrb[30].mxu0 }
 0xc04   :  { %2666 = vtanh.f32 %v989_v61  ;;  %v2442_v1 = vpop.f32.mrb[31].mxu0  ;;  %v2167_v15 = vmul.f32 -1.442695, %v989_v61 }
 0xc05   :  { %2668 = vpow2.f32 %v2165_v7 }
 0xc06   :  { %2670 = vpow2.f32 %v2167_v15 }
 0xc09   :  { %v2665_v3 = vpop.eup %2664 }
 0xc0a   :  { %934 = vrot.lane.b32.xlu0 %v2665_v3, %s2770_s3 }
 0xc0e   :  { %v2667_v4 = vpop.eup %2666 }
 0xc0f   :  { %999 = vrot.lane.b32.xlu1 %v2667_v4, %s2770_s3  ;;  %v2669_v10 = vpop.eup %2668 }
 0xc10   :  { %v928_v13 = vadd.f32 1.0, %v2669_v10  ;;  %v2671_v14 = vpop.eup %2670 }
 0xc11   :  { %v993_v43 = vadd.f32 1.0, %v2671_v14 }
 0xc12   :  { %2672 = vrcp.f32 %v928_v13 }
 0xc13   :  { %2674 = vrcp.f32 %v993_v43 }
 0xc1c   :  { %v2673_v16 = vpop.eup %2672 }
 0xc1d   :  { %v2675_v18 = vpop.eup %2674  ;;  %v932_v21 = vmul.f32 %v2673_v16, %v3055_v30 }
 0xc1e   :  { %v997_v24 = vmul.f32 %v2675_v18, %v3057_v35 }
 0xc7c   :  { %v935_v17 = vpop.permute.xlu0 %934 }
 0xc7d   :  { %v937_v12 = vmul.f32 %v2673_v16, %v935_v17 }
 0xc7f   :  { %939 = vrot.lane.b32.xlu0 %v937_v12, %s2771_s11 }
 0xc81   :  { %v1000_v19 = vpop.permute.xlu1 %999 }
 0xc82   :  { %v1002_v20 = vmul.f32 %v2675_v18, %v1000_v19 }
 0xc84   :  { %1004 = vrot.lane.b32.xlu1 %v1002_v20, %s2771_s11 }
 0xcf1   :  { %v940_v22 = vpop.permute.xlu0 %939 }
 0xcf2   :  { %v3094_v23 = vadd.f32 %v940_v22, %v932_v21 }
 0xcf4   :  { %2676 = vtanh.f32 %v3094_v23 }
 0xcf6   :  { %v1005_v25 = vpop.permute.xlu1 %1004 }
 0xcf7   :  { %v3098_v28 = vadd.f32 %v1005_v25, %v997_v24 }
 0xcf9   :  { %2678 = vtanh.f32 %v3098_v28 }
 0xcfe   :  { %v2677_v38 = vpop.eup %2676 }
 0xcff   :  { %945 = vrot.lane.b32.xlu0 %v2677_v38, %s2770_s3 }
 0xd03   :  { %v2679_v31 = vpop.eup %2678 }
 0xd04   :  { %1010 = vrot.lane.b32.xlu1 %v2679_v31, %s2770_s3 }
 0xd71   :  { %v946_v29 = vpop.permute.xlu0 %945 }
 0xd72   :  { %v948_v30 = vmul.f32 %v2673_v16, %v946_v29 }
 0xd74   :  { %v1015_v27 = vpack.c.bf16 %v948_v30, %v948_v30 }
 0xd76   :  { %1017 = vrot.lane.b32.xlu0 %v1015_v27, %s2771_s11  ;;  %v1011_v39 = vpop.permute.xlu1 %1010 }
 0xd77   :  { %v1013_v34 = vmul.f32 %v2675_v18, %v1011_v39  ;;  %v3150_v39 = vld [vmem:[%s3361_s1 + $0x8] sm:$0xff]  }
 0xd79   :  { %v1014_v40 = vpack.c.bf16 %v1013_v34, %v1013_v34  ;;  %v3163_v34 = vld [vmem:[%s3361_s1 + $0x10] sm:$0xff]  }
 0xd7b   :  { %1063 = vrot.lane.b32.xlu1 %v1014_v40, %s2771_s11 }
 0xde8   :  { %v1018_v35 = vpop.permute.xlu0 %1017 }
 0xde9   :  { %2448 = vmatmul.mubr.msk.bf16.vlgmr.msra.gmra.mrb[28].mxu1 %vm188_vm2, %v1018_v35 }
 0xdea   :  { %2460 = vmatpush3.bf16.msra.mxu1 %v2843_v2  ;;  %2463 = vmatprep.mubr.msk.bf16.mxu1 %vm2768_vm0, %v2767_v0 }
 0xdeb   :  { %2461 = vmatprep.subr.bf16.mxu1 %v2767_v0 }
 0xded   :  { %v1064_v41 = vpop.permute.xlu1 %1063 }
 0xdee   :  { %2462 = vmatpush3.bf16.msra.mxu1 %v2857_v5  ;;  %2456 = vmatmul.mubr.msk.bf16.vlgmr.msra.gmra.mrb[32].mxu0 %vm188_vm2, %v1064_v41 }
 0xdef   :  { %2475 = vmatprep.subr.bf16.mxu1 %v2767_v0  ;;  %2468 = vmatpush3.bf16.msra.mxu0 %v2895_v32 }
 0xdf0   :  { %2469 = vmatprep.subr.bf16.mxu0 %v2767_v0  ;;  %2471 = vmatprep.mubr.msk.bf16.mxu0 %vm2768_vm0, %v2767_v0 }
 0xdf1   :  { %2464 = vmatmul.mubr.msk.bf16.vlgmr.msra.gmra.mrb[32].mxu1 %vm188_vm2, %v1064_v41 }
 0xdf2   :  { %2476 = vmatpush3.bf16.msra.mxu1 %v2900_v33  ;;  %2479 = vmatprep.mubr.msk.bf16.mxu1 %vm2768_vm0, %v2767_v0 }
 0xdf3   :  { %2477 = vmatprep.subr.bf16.mxu1 %v2767_v0  ;;  %2470 = vmatpush3.bf16.msra.mxu0 %v2913_v36 }
 0xdf4   :  { %2483 = vmatprep.subr.bf16.mxu0 %v2767_v0 }
 0xdf6   :  { %2478 = vmatpush3.bf16.msra.mxu1 %v2918_v37 }
 0xdf7   :  { %2491 = vmatprep.subr.bf16.mxu1 %v2767_v0 }
 0xebc   :  { %v1056_v2 = vpop.f32.mrb[28].mxu1 }
 0xebd   :  { %v2449_v5 = vpop.f32.mrb[29].mxu1 }
 0xebe   :  { %v1059_v46 = vpop.f32.mrb[30].mxu1 }
 0xebf   :  { %v2450_v26 = vpop.f32.mrb[31].mxu1 }
 0xec1   :  { %v1102_v47 = vpop.f32.mrb[32].mxu0 }
 0xec2   :  { %v1103_v48 = vadd.f32 %v1102_v47, %v1056_v2  ;;  %v2457_v49 = vpop.f32.mrb[33].mxu0  ;;  %v170_v47 = vadd.f32 %v2939_v42, %v2878_v11 }
 0xec3   :  { %v1105_v52 = vpop.f32.mrb[34].mxu0 }
 0xec4   :  { %v1108_v54 = vadd.f32 %v1103_v48, %v2967_v53  ;;  %v1167_v55 = vpop.f32.mrb[32].mxu1  ;;  %v2458_v56 = vpop.f32.mrb[35].mxu0 }
 0xec5   :  { %v1173_v57 = vadd.f32 %v1167_v55, %v165_v50  ;;  %v2465_v58 = vpop.f32.mrb[33].mxu1 }
 0xec6   :  { %2680 = vtanh.f32 %v1108_v54  ;;  %v1170_v59 = vpop.f32.mrb[34].mxu1  ;;  %v2170_v63 = vmul.f32 -1.442695, %v1108_v54 }
 0xec7   :  { %2682 = vtanh.f32 %v1173_v57  ;;  %v2466_v60 = vpop.f32.mrb[35].mxu1  ;;  %v2172_v1 = vmul.f32 -1.442695, %v1173_v57 }
 0xec8   :  { %2684 = vpow2.f32 %v2170_v63 }
 0xec9   :  { %2686 = vpow2.f32 %v2172_v1 }
 0xed0   :  { %v2681_v61 = vpop.eup %2680 }
 0xed1   :  { %v2683_v62 = vpop.eup %2682  ;;  %1118 = vrot.lane.b32.xlu0 %v2681_v61, %s2770_s3 }
 0xed2   :  { %1183 = vrot.lane.b32.xlu1 %v2683_v62, %s2770_s3  ;;  %v2685_v45 = vpop.eup %2684 }
 0xed3   :  { %v2687_v3 = vpop.eup %2686  ;;  %v1112_v4 = vadd.f32 1.0, %v2685_v45 }
 0xed4   :  { %v1177_v7 = vadd.f32 1.0, %v2687_v3 }
 0xed5   :  { %2688 = vrcp.f32 %v1112_v4 }
 0xed6   :  { %2690 = vrcp.f32 %v1177_v7 }
 0xedf   :  { %v2689_v15 = vpop.eup %2688 }
 0xee0   :  { %v2691_v13 = vpop.eup %2690  ;;  %v1116_v17 = vmul.f32 %v2689_v15, %v3094_v23 }
 0xee1   :  { %v1181_v12 = vmul.f32 %v2691_v13, %v3098_v28 }
 0xf43   :  { %v1119_v10 = vpop.permute.xlu0 %1118 }
 0xf44   :  { %v1184_v14 = vpop.permute.xlu1 %1183  ;;  %v1121_v43 = vmul.f32 %v2689_v15, %v1119_v10 }
 0xf45   :  { %v1186_v16 = vmul.f32 %v2691_v13, %v1184_v14 }
 0xf46   :  { %1123 = vrot.lane.b32.xlu0 %v1121_v43, %s2771_s11 }
 0xf47   :  { %1188 = vrot.lane.b32.xlu1 %v1186_v16, %s2771_s11 }
 0xfb8   :  { %v1124_v18 = vpop.permute.xlu0 %1123 }
 0xfb9   :  { %v1189_v19 = vpop.permute.xlu1 %1188  ;;  %v3135_v20 = vadd.f32 %v1124_v18, %v1116_v17 }
 0xfba   :  { %v3137_v21 = vadd.f32 %v1189_v19, %v1181_v12 }
 0xfbb   :  { %2692 = vtanh.f32 %v3135_v20 }
 0xfbc   :  { %2694 = vtanh.f32 %v3137_v21 }
 0xfc5   :  { %v2693_v22 = vpop.eup %2692 }
 0xfc6   :  { %v2695_v24 = vpop.eup %2694  ;;  %1129 = vrot.lane.b32.xlu0 %v2693_v22, %s2770_s3 }
 0xfc7   :  { %1194 = vrot.lane.b32.xlu1 %v2695_v24, %s2770_s3 }
0x1038   :  { %v1130_v25 = vpop.permute.xlu0 %1129 }
0x1039   :  { %v1195_v23 = vpop.permute.xlu1 %1194  ;;  %v1132_v38 = vmul.f32 %v2689_v15, %v1130_v25  ;;  %v2738_v25 = vld [vmem:[%s3362_s2 + $0x10] sm:$0xff]  }
0x103a   :  { %v1197_v28 = vmul.f32 %v2691_v13, %v1195_v23  ;;  %v2739_v23 = vld [vmem:[%s3362_s2] sm:$0xff]  }
0x103b   :  { %v1199_v31 = vpack.c.bf16 %v1132_v38, %v1132_v38  ;;  %v2740_v38 = vld [vmem:[%s3362_s2 + $0x18] sm:$0xff]  }
0x103c   :  { %v1198_v29 = vpack.c.bf16 %v1197_v28, %v1197_v28  ;;  %v2741_v28 = vld [vmem:[%s3362_s2 + $0x8] sm:$0xff]  }
0x103d   :  { %1201 = vrot.lane.b32.xlu0 %v1199_v31, %s2771_s11 }
0x103e   :  { %1247 = vrot.lane.b32.xlu1 %v1198_v29, %s2771_s11 }
0x10af   :  { %v1202_v30 = vpop.permute.xlu0 %1201 }
0x10b0   :  { %v1248_v27 = vpop.permute.xlu1 %1247  ;;  %2472 = vmatmul.mubr.msk.bf16.vlgmr.msra.gmra.mrb[36].mxu0 %vm188_vm2, %v1202_v30 }
0x10b1   :  { %2480 = vmatmul.mubr.msk.bf16.vlgmr.msra.gmra.mrb[36].mxu1 %vm188_vm2, %v1248_v27  ;;  %2484 = vmatpush3.bf16.msra.mxu0 %v3150_v39 }
0x10b2   :  { %2485 = vmatprep.subr.bf16.mxu0 %v2767_v0  ;;  %2487 = vmatprep.mubr.msk.bf16.mxu0 %vm2768_vm0, %v2767_v0 }
0x10b3   :  { %2492 = vmatpush3.bf16.msra.mxu1 %v2895_v32  ;;  %2495 = vmatprep.mubr.msk.bf16.mxu1 %vm2768_vm0, %v2767_v0 }
0x10b4   :  { %2493 = vmatprep.subr.bf16.mxu1 %v2767_v0 }
0x10b5   :  { %2486 = vmatpush3.bf16.msra.mxu0 %v3163_v34 }
0x10b6   :  { %2499 = vmatprep.subr.bf16.mxu0 %v2767_v0 }
0x10b7   :  { %2494 = vmatpush3.bf16.msra.mxu1 %v2913_v36 }
0x10b8   :  { %2488 = vmatmul.mubr.msk.bf16.vlgmr.msra.gmra.mrb[40].mxu0 %vm188_vm2, %v1248_v27  ;;  %2507 = vmatprep.subr.bf16.mxu1 %v2767_v0 }
0x10b9   :  { %2500 = vmatpush3.bf16.msra.mxu0 %v2900_v33  ;;  %2503 = vmatprep.mubr.msk.bf16.mxu0 %vm2768_vm0, %v2767_v0 }
0x10ba   :  { %2501 = vmatprep.subr.bf16.mxu0 %v2767_v0 }
0x10bd   :  { %2502 = vmatpush3.bf16.msra.mxu0 %v2918_v37 }
0x10be   :  { %2515 = vmatprep.subr.bf16.mxu0 %v2767_v0 }
0x1183   :  { %v1240_v32 = vpop.f32.mrb[36].mxu0 }
0x1184   :  { %v1286_v40 = vpop.f32.mrb[36].mxu1  ;;  %v2473_v35 = vpop.f32.mrb[37].mxu0 }
0x1185   :  { %v1287_v41 = vadd.f32 %v1286_v40, %v1240_v32  ;;  %v2481_v36 = vpop.f32.mrb[37].mxu1  ;;  %v1243_v2 = vpop.f32.mrb[38].mxu0  ;;  %v173_v40 = vadd.f32 %v2943_v44, %v2878_v11 }
0x1186   :  { %v1289_v5 = vpop.f32.mrb[38].mxu1  ;;  %v2474_v46 = vpop.f32.mrb[39].mxu0 }
0x1187   :  { %v1292_v26 = vadd.f32 %v1287_v41, %v2967_v53  ;;  %v2482_v33 = vpop.f32.mrb[39].mxu1 }
0x1189   :  { %2696 = vtanh.f32 %v1292_v26  ;;  %v2175_v56 = vmul.f32 -1.442695, %v1292_v26 }
0x118b   :  { %v1351_v48 = vpop.f32.mrb[40].mxu0 }
0x118c   :  { %v1357_v49 = vadd.f32 %v1351_v48, %v170_v47  ;;  %v2489_v37 = vpop.f32.mrb[41].mxu0 }
0x118d   :  { %v1354_v50 = vpop.f32.mrb[42].mxu0 }
0x118e   :  { %2698 = vtanh.f32 %v1357_v49  ;;  %v2490_v52 = vpop.f32.mrb[43].mxu0  ;;  %v2177_v57 = vmul.f32 -1.442695, %v1357_v49 }
0x118f   :  { %2700 = vpow2.f32 %v2175_v56 }
0x1190   :  { %2702 = vpow2.f32 %v2177_v57 }
0x1193   :  { %v2697_v54 = vpop.eup %2696 }
0x1194   :  { %1302 = vrot.lane.b32.xlu0 %v2697_v54, %s2770_s3 }
0x1198   :  { %v2699_v55 = vpop.eup %2698 }
0x1199   :  { %1367 = vrot.lane.b32.xlu1 %v2699_v55, %s2770_s3  ;;  %v2701_v58 = vpop.eup %2700 }
0x119a   :  { %v1296_v59 = vadd.f32 1.0, %v2701_v58  ;;  %v2703_v60 = vpop.eup %2702 }
0x119b   :  { %v1361_v42 = vadd.f32 1.0, %v2703_v60 }
0x119c   :  { %2704 = vrcp.f32 %v1296_v59 }
0x119d   :  { %2706 = vrcp.f32 %v1361_v42 }
0x11a6   :  { %v2705_v61 = vpop.eup %2704 }
0x11a7   :  { %v2707_v1 = vpop.eup %2706  ;;  %v1300_v4 = vmul.f32 %v2705_v61, %v3135_v20 }
0x11a8   :  { %v1365_v10 = vmul.f32 %v2707_v1, %v3137_v21 }
0x1206   :  { %v1303_v62 = vpop.permute.xlu0 %1302 }
0x1207   :  { %v1305_v63 = vmul.f32 %v2705_v61, %v1303_v62 }
0x1209   :  { %1307 = vrot.lane.b32.xlu0 %v1305_v63, %s2771_s11 }
0x120b   :  { %v1368_v45 = vpop.permute.xlu1 %1367 }
0x120c   :  { %v1370_v3 = vmul.f32 %v2707_v1, %v1368_v45 }
0x120e   :  { %1372 = vrot.lane.b32.xlu1 %v1370_v3, %s2771_s11 }
0x127b   :  { %v1308_v7 = vpop.permute.xlu0 %1307 }
0x127c   :  { %v3184_v15 = vadd.f32 %v1308_v7, %v1300_v4 }
0x127e   :  { %2708 = vtanh.f32 %v3184_v15 }
0x1280   :  { %v1373_v13 = vpop.permute.xlu1 %1372 }
0x1281   :  { %v3188_v14 = vadd.f32 %v1373_v13, %v1365_v10 }
0x1283   :  { %2710 = vtanh.f32 %v3188_v14 }
0x1288   :  { %v2709_v43 = vpop.eup %2708 }
0x1289   :  { %1313 = vrot.lane.b32.xlu0 %v2709_v43, %s2770_s3 }
0x128d   :  { %v2711_v16 = vpop.eup %2710 }
0x128e   :  { %1378 = vrot.lane.b32.xlu1 %v2711_v16, %s2770_s3 }
0x12fb   :  { %v1314_v17 = vpop.permute.xlu0 %1313 }
0x12fc   :  { %v1316_v12 = vmul.f32 %v2705_v61, %v1314_v17 }
0x12fe   :  { %v1383_v18 = vpack.c.bf16 %v1316_v12, %v1316_v12 }
0x1300   :  { %1385 = vrot.lane.b32.xlu0 %v1383_v18, %s2771_s11  ;;  %v1379_v19 = vpop.permute.xlu1 %1378 }
0x1301   :  { %v1381_v20 = vmul.f32 %v2707_v1, %v1379_v19 }
0x1303   :  { %v1382_v22 = vpack.c.bf16 %v1381_v20, %v1381_v20 }
0x1305   :  { %1431 = vrot.lane.b32.xlu1 %v1382_v22, %s2771_s11 }
0x1372   :  { %v1386_v21 = vpop.permute.xlu0 %1385 }
0x1373   :  { %2496 = vmatmul.mubr.msk.bf16.vlgmr.msra.gmra.mrb[40].mxu1 %vm188_vm2, %v1386_v21 }
0x1374   :  { %2508 = vmatpush3.bf16.msra.mxu1 %v3150_v39  ;;  %2511 = vmatprep.mubr.msk.bf16.mxu1 %vm2768_vm0, %v2767_v0 }
0x1375   :  { %2509 = vmatprep.subr.bf16.mxu1 %v2767_v0 }
0x1377   :  { %v1432_v24 = vpop.permute.xlu1 %1431 }
0x1378   :  { %2510 = vmatpush3.bf16.msra.mxu1 %v3163_v34  ;;  %2504 = vmatmul.mubr.msk.bf16.vlgmr.msra.gmra.mrb[44].mxu0 %vm188_vm2, %v1432_v24 }
0x1379   :  { %2523 = vmatprep.subr.bf16.mxu1 %v2767_v0  ;;  %2516 = vmatpush3.bf16.msra.mxu0 %v2738_v25 }
0x137a   :  { %2517 = vmatprep.subr.bf16.mxu0 %v2767_v0  ;;  %2519 = vmatprep.mubr.msk.bf16.mxu0 %vm2768_vm0, %v2767_v0 }
0x137b   :  { %2512 = vmatmul.mubr.msk.bf16.vlgmr.msra.gmra.mrb[44].mxu1 %vm188_vm2, %v1432_v24 }
0x137c   :  { %2524 = vmatpush3.bf16.msra.mxu1 %v2739_v23  ;;  %2527 = vmatprep.mubr.msk.bf16.mxu1 %vm2768_vm0, %v2767_v0 }
0x137d   :  { %2525 = vmatprep.subr.bf16.mxu1 %v2767_v0  ;;  %2518 = vmatpush3.bf16.msra.mxu0 %v2740_v38 }
0x1380   :  { %2526 = vmatpush3.bf16.msra.mxu1 %v2741_v28 }
0x1446   :  { %v1424_v31 = vpop.f32.mrb[40].mxu1 }
0x1447   :  { %v2497_v29 = vpop.f32.mrb[41].mxu1 }
0x1448   :  { %v1427_v30 = vpop.f32.mrb[42].mxu1 }
0x1449   :  { %v2498_v27 = vpop.f32.mrb[43].mxu1 }
0x144b   :  { %v1470_v39 = vpop.f32.mrb[44].mxu0 }
0x144c   :  { %v1471_v34 = vadd.f32 %v1470_v39, %v1424_v31  ;;  %v2505_v32 = vpop.f32.mrb[45].mxu0 }
0x144d   :  { %v1473_v35 = vpop.f32.mrb[46].mxu0 }
0x144e   :  { %v1476_v41 = vadd.f32 %v1471_v34, %v2967_v53  ;;  %v1535_v36 = vpop.f32.mrb[44].mxu1  ;;  %v2506_v2 = vpop.f32.mrb[47].mxu0  ;;  %v2581_v35 = vld [vmem:[%s3364_s4 + $0x14] ss:$8 sps:$4 sm:$0xff]  }
0x144f   :  { %v1541_v5 = vadd.f32 %v1535_v36, %v173_v40  ;;  %v2513_v46 = vpop.f32.mrb[45].mxu1  ;;  %v2578_v40 = vld [vmem:[%s3364_s4 + $0x4] ss:$8 sps:$4 sm:$0xff]  }
0x1450   :  { %2712 = vtanh.f32 %v1476_v41  ;;  %v1538_v26 = vpop.f32.mrb[46].mxu1  ;;  %v2180_v49 = vmul.f32 -1.442695, %v1476_v41  ;;  %1736 = vmatprep.subr.bf16.mxu0 %v2578_v40  ;;  %v2579_v41 = vld [vmem:[%s3364_s4 + $0x10] ss:$8 sps:$4 sm:$0xff]   ;;  %v2582_v2 = vld [vmem:[%s3365_s5 + $0x40] sm:$0xff]  }
0x1451   :  { %2714 = vtanh.f32 %v1541_v5  ;;  %v2514_v33 = vpop.f32.mrb[47].mxu1  ;;  %v2182_v37 = vmul.f32 -1.442695, %v1541_v5  ;;  %v2583_v5 = vld [vmem:[%s3365_s5] sm:$0xff]   ;;  %v2584_v46 = vld [vmem:[%s3365_s5 + $0x48] sm:$0xff]   ;;  %2295 = vmatprep.subr.bf16.mxu1 %v2582_v2 }
0x1452   :  { %2716 = vpow2.f32 %v2180_v49  ;;  %v2585_v26 = vld [vmem:[%s3365_s5 + $0x8] sm:$0xff]   ;;  %v2586_v33 = vld [vmem:[%s3365_s5 + $0x50] sm:$0xff]   ;;  %v2588_v49 = vld [vmem:[%s3365_s5 + $0x58] sm:$0xff]  }
0x1453   :  { %2718 = vpow2.f32 %v2182_v37 }
0x145a   :  { %v2713_v47 = vpop.eup %2712 }
0x145b   :  { %v2715_v48 = vpop.eup %2714  ;;  %1486 = vrot.lane.b32.xlu0 %v2713_v47, %s2770_s3  ;;  %v2587_v47 = vld [vmem:[%s3365_s5 + $0x10] sm:$0xff]  }
0x145c   :  { %1551 = vrot.lane.b32.xlu1 %v2715_v48, %s2770_s3  ;;  %v2717_v11 = vpop.eup %2716 }
0x145d   :  { %v2719_v44 = vpop.eup %2718  ;;  %v1480_v50 = vadd.f32 1.0, %v2717_v11 }
0x145e   :  { %v1545_v52 = vadd.f32 1.0, %v2719_v44  ;;  %v2589_v44 = vld [vmem:[%s3365_s5 + $0x18] sm:$0xff]  }
0x145f   :  { %2720 = vrcp.f32 %v1480_v50  ;;  %v2590_v50 = vld [vmem:[%s3365_s5 + $0x60] sm:$0xff]  }
0x1460   :  { %2722 = vrcp.f32 %v1545_v52  ;;  %v2591_v52 = vld [vmem:[%s3365_s5 + $0x20] sm:$0xff]  }
0x1469   :  { %v2721_v54 = vpop.eup %2720 }
0x146a   :  { %v2723_v56 = vpop.eup %2722  ;;  %v1484_v60 = vmul.f32 %v2721_v54, %v3184_v15 }
0x146b   :  { %v1549_v42 = vmul.f32 %v2723_v56, %v3188_v14 }
0x14cd   :  { %v1487_v55 = vpop.permute.xlu0 %1486 }
0x14ce   :  { %v1552_v57 = vpop.permute.xlu1 %1551  ;;  %v1489_v58 = vmul.f32 %v2721_v54, %v1487_v55  ;;  %v2593_v55 = vld [vmem:[%s3365_s5 + $0x28] sm:$0xff]  }
0x14cf   :  { %v1554_v59 = vmul.f32 %v2723_v56, %v1552_v57 }
0x14d0   :  { %1491 = vrot.lane.b32.xlu0 %v1489_v58, %s2771_s11  ;;  %v2595_v58 = vld [vmem:[%s3365_s5 + $0x30] sm:$0xff]  }
0x14d1   :  { %1556 = vrot.lane.b32.xlu1 %v1554_v59, %s2771_s11  ;;  %v2596_v59 = vld [vmem:[%s3365_s5 + $0x78] sm:$0xff]  }
0x1542   :  { %v1492_v61 = vpop.permute.xlu0 %1491 }
0x1543   :  { %v1557_v62 = vpop.permute.xlu1 %1556  ;;  %v1494_v63 = vadd.f32 %v1492_v61, %v1484_v60  ;;  %v2597_v60 = vld [vmem:[%s3365_s5 + $0x38] sm:$0xff]   ;;  %v2599_v61 = vld [vmem:[%s3366_s6 + $0x8] sm:$0xff]  }
0x1544   :  { %v1559_v1 = vadd.f32 %v1557_v62, %v1549_v42  ;;  %v2598_v42 = vld [vmem:[%s3366_s6] sm:$0xff]   ;;  %v2600_v62 = vld [vmem:[%s3366_s6 + $0x10] sm:$0xff]  }
0x1545   :  { %2724 = vtanh.f32 %v1494_v63 }
0x1546   :  { %2726 = vtanh.f32 %v1559_v1  ;;  %v2602_v1 = vld [vmem:[%s3366_s6 + $0x20] sm:$0xff]  }
0x154f   :  { %v2725_v45 = vpop.eup %2724 }
0x1550   :  { %v2727_v3 = vpop.eup %2726  ;;  %1497 = vrot.lane.b32.xlu0 %v2725_v45, %s2770_s3  ;;  %v2603_v45 = vld [vmem:[%s3366_s6 + $0x28] sm:$0xff]  }
0x1551   :  { %1562 = vrot.lane.b32.xlu1 %v2727_v3, %s2770_s3  ;;  %v1685_v3 = vld [vmem:[#allocation2] sm:$0xff] }
0x15c2   :  { %v1498_v4 = vpop.permute.xlu0 %1497 }
0x15c3   :  { %v1563_v7 = vpop.permute.xlu1 %1562  ;;  %v1500_v10 = vmul.f32 %v2721_v54, %v1498_v4  ;;  %v2592_v54 = vld [vmem:[%s3365_s5 + $0x68] sm:$0xff]   ;;  %v1698_v4 = vsub.s32 4, %v2866_v8 }
0x15c4   :  { %v1565_v13 = vmul.f32 %v2723_v56, %v1563_v7  ;;  %v2594_v56 = vld [vmem:[%s3365_s5 + $0x70] sm:$0xff]   ;;  %v1695_v7 = vrot.slane %v1685_v3, %v2869_v9 }
0x15c5   :  { %v1567_v43 = vpack.c.bf16 %v1500_v10, %v1500_v10  ;;  %v1699_v10 = vrot.slane %v1685_v3, %v1698_v4 }
0x15c6   :  { %v1566_v15 = vpack.c.bf16 %v1565_v13, %v1565_v13  ;;  %v1705_v13 = vrot.slane %v1695_v7, %v2869_v9 }
0x15c7   :  { %1569 = vrot.lane.b32.xlu0 %v1567_v43, %s2771_s11  ;;  %v1709_v43 = vrot.slane %v1699_v10, %v2869_v9  ;;  %v2605_v9 = vld [vmem:[%s3366_s6 + $0x38] sm:$0xff]  }
0x15c8   :  { %1615 = vrot.lane.b32.xlu1 %v1566_v15, %s2771_s11 }
0x1639   :  { %v1570_v14 = vpop.permute.xlu0 %1569 }
0x163a   :  { %v1616_v16 = vpop.permute.xlu1 %1615  ;;  %2520 = vmatmul.mubr.msk.bf16.vlgmr.msra.gmra.mrb[48].mxu0 %vm188_vm2, %v1570_v14 }
0x163b   :  { %2528 = vmatmul.mubr.msk.bf16.vlgmr.msra.gmra.mrb[48].mxu1 %vm188_vm2, %v1616_v16  ;;  %1768 = vmatprep.mubr.bf16.mxu0 %v2769_v6 }
0x163c   :  { %2296 = vmatpush3.bf16.msra.mxu1 %v2583_v5 }
0x163d   :  { %2297 = vmatprep.subr.bf16.mxu1 %v2584_v46 }
0x1640   :  { %2298 = vmatpush3.bf16.msra.mxu1 %v2585_v26 }
0x1641   :  { %2299 = vmatprep.subr.bf16.mxu1 %v2586_v33 }
0x1644   :  { %2300 = vmatpush3.bf16.msra.mxu1 %v2587_v47 }
0x1645   :  { %2301 = vmatprep.subr.bf16.mxu1 %v2588_v49 }
0x1648   :  { %2302 = vmatpush3.bf16.msra.mxu1 %v2589_v44 }
0x1649   :  { %2303 = vmatprep.subr.bf16.mxu1 %v2590_v50 }
0x164c   :  { %2304 = vmatpush3.bf16.msra.mxu1 %v2591_v52 }
0x164d   :  { %2305 = vmatprep.subr.bf16.mxu1 %v2592_v54 }
0x1650   :  { %2306 = vmatpush3.bf16.msra.mxu1 %v2593_v55 }
0x1651   :  { %2307 = vmatprep.subr.bf16.mxu1 %v2594_v56 }
0x1654   :  { %2308 = vmatpush3.bf16.msra.mxu1 %v2595_v58 }
0x1655   :  { %2309 = vmatprep.subr.bf16.mxu1 %v2596_v59 }
0x1658   :  { %2310 = vmatpush3.bf16.msra.mxu1 %v2597_v60 }
0x1659   :  { %2551 = vmatprep.subr.bf16.mxu1 %v2767_v0 }
0x170d   :  { %v1608_v17 = vpop.f32.mrb[48].mxu0 }
0x170e   :  { %v1654_v12 = vpop.f32.mrb[48].mxu1  ;;  %v2521_v18 = vpop.f32.mrb[49].mxu0 }
0x170f   :  { %v1655_v19 = vadd.f32 %v1654_v12, %v1608_v17  ;;  %v2529_v20 = vpop.f32.mrb[49].mxu1  ;;  %v1611_v22 = vpop.f32.mrb[50].mxu0 }
0x1710   :  { %v1657_v21 = vpop.f32.mrb[50].mxu1  ;;  %v2522_v24 = vpop.f32.mrb[51].mxu0  ;;  %v2604_v22 = vld [vmem:[%s3366_s6 + $0x30] sm:$0xff]  }
0x1711   :  { %v1660_v25 = vadd.f32 %v1655_v19, %v2967_v53  ;;  %v2530_v23 = vpop.f32.mrb[51].mxu1  ;;  %v2576_v53 = vld [vmem:[%s3364_s4] ss:$8 sps:$4 sm:$0xff]  }
0x1712   :  { %1737 = vmatpush1.bf16.msra.mxu0 %v2576_v53  ;;  %v2606_v21 = vld [vmem:[%s3367_s7] sm:$0xff]  }
0x1713   :  { %2728 = vtanh.f32 %v1660_v25  ;;  %v2185_v28 = vmul.f32 -1.442695, %v1660_v25  ;;  %1738 = vmatprep.subr.bf16.mxu0 %v2581_v35  ;;  %v1814_v25 = vrot.slane %v1685_v3, %v370_v51 }
0x1715   :  { %2730 = vpow2.f32 %v2185_v28 }
0x1716   :  { %1739 = vmatpush1.bf16.msra.mxu0 %v2579_v41 }
0x1717   :  { %2531 = vmatprep.subr.bf16.mxu0 %v2767_v0 }
0x171d   :  { %v2729_v38 = vpop.eup %2728 }
0x171e   :  { %1670 = vrot.lane.b32.xlu0 %v2729_v38, %s2770_s3 }
0x171f   :  { %v2731_v31 = vpop.eup %2730 }
0x1720   :  { %v1664_v29 = vadd.f32 1.0, %v2731_v31 }
0x1722   :  { %2732 = vrcp.f32 %v1664_v29 }
0x172c   :  { %v2733_v6 = vpop.eup %2732 }
0x172d   :  { %v1668_v39 = vmul.f32 %v2733_v6, %v1494_v63  ;;  %v2601_v63 = vld [vmem:[%s3366_s6 + $0x18] sm:$0xff]  }
0x1790   :  { %v1671_v30 = vpop.permute.xlu0 %1670 }
0x1791   :  { %v1673_v27 = vmul.f32 %v2733_v6, %v1671_v30 }
0x1793   :  { %1675 = vrot.lane.b32.xlu1 %v1673_v27, %s2771_s11  ;;  %v2607_v27 = vld [vmem:[%s3367_s7 + $0x8] sm:$0xff]  }
0x1805   :  { %v1676_v34 = vpop.permute.xlu1 %1675 }
0x1806   :  { %v1678_v32 = vadd.f32 %v1676_v34, %v1668_v39  ;;  %v1971_v39 = vsub.s32 2, %v2866_v8 }
0x1808   :  { %2734 = vtanh.f32 %v1678_v32 }
0x1812   :  { %v2735_v36 = vpop.eup %2734 }
0x1813   :  { %1681 = vrot.lane.b32.xlu0 %v2735_v36, %s2770_s3  ;;  %v2069_v36 = vsub.s32 3, %v2866_v8 }
0x1815   :  { %v2070_v2 = vrot.slane %v1685_v3, %v2069_v36 }
0x1885   :  { %v1682_v48 = vpop.permute.xlu0 %1681 }
0x1886   :  { %v1684_v37 = vmul.f32 %v2733_v6, %v1682_v48 }
0x1888   :  { %v1686_v11 = vpack.c.bf16 %v1684_v37, %v1684_v37 }
0x188a   :  { %1711 = vrot.lane.b32.xlu1 %v1686_v11, %s2771_s11 }
0x18fc   :  { %v1712_v57 = vpop.permute.xlu1 %1711 }
0x18fd   :  { %2190 = vmatmul.mubr.msk.bf16.vlgmr.msra.gmra.mrb[52].mxu0 %vm188_vm2, %v1712_v57 }
0x18fe   :  { %2547 = vmatprep.mubr.msk.bf16.mxu0 %vm2768_vm0, %v2767_v0  ;;  %2532 = vmatpush3.bf16.msra.mxu0 %v2598_v42 }
0x18ff   :  { %2533 = vmatprep.subr.bf16.mxu0 %v2767_v0 }
0x1902   :  { %2534 = vmatpush3.bf16.msra.mxu0 %v2599_v61 }
0x1903   :  { %2535 = vmatprep.subr.bf16.mxu0 %v2767_v0 }
0x1906   :  { %2536 = vmatpush3.bf16.msra.mxu0 %v2600_v62 }
0x1907   :  { %2537 = vmatprep.subr.bf16.mxu0 %v2767_v0 }
0x190a   :  { %2538 = vmatpush3.bf16.msra.mxu0 %v2601_v63 }
0x190b   :  { %2539 = vmatprep.subr.bf16.mxu0 %v2767_v0 }
0x190e   :  { %2540 = vmatpush3.bf16.msra.mxu0 %v2602_v1 }
0x190f   :  { %2541 = vmatprep.subr.bf16.mxu0 %v2767_v0 }
0x1912   :  { %2542 = vmatpush3.bf16.msra.mxu0 %v2603_v45 }
0x1913   :  { %2543 = vmatprep.subr.bf16.mxu0 %v2767_v0 }
0x1916   :  { %2544 = vmatpush3.bf16.msra.mxu0 %v2604_v22 }
0x1917   :  { %2545 = vmatprep.subr.bf16.mxu0 %v2767_v0 }
0x191a   :  { %2546 = vmatpush3.bf16.msra.mxu0 %v2605_v9 }
0x19d0   :  { %v1770_v15 = vpop.f32.mrb[52].mxu0 }
0x19d1   :  { %v1771_v14 = vadd.f32 %v1770_v15, %v1705_v13  ;;  %v1772_v16 = vpop.f32.mrb[53].mxu0 }
0x19d2   :  { %v1773_v17 = vadd.f32 %v1772_v16, %v1709_v43  ;;  %v1774_v12 = vpop.f32.mrb[54].mxu0 }
0x19d3   :  { %v1775_v18 = vpop.f32.mrb[55].mxu0  ;;  %v1777_v20 = vpack.c.bf16 %v1771_v14, %v1771_v14 }
0x19d4   :  { %v1778_v19 = vpack.c.bf16 %v1773_v17, %v1773_v17 }
0x19d6   :  { %1943 = vmatprep.mubr.bf16.mxu1 %v1778_v19 }
0x19d7   :  { %1944 = vmatmul.mubr.bf16.vlgmr.msra.gmra.mrb[52].mxu1 %v1777_v20 }
0x19d8   :  { %2555 = vmatprep.mubr.msk.bf16.mxu1 %vm2768_vm0, %v2767_v0  ;;  %2552 = vmatpush3.bf16.msra.mxu1 %v2606_v21 }
0x19d9   :  { %2553 = vmatprep.subr.bf16.mxu1 %v2767_v0  ;;  %v1972_v0 = vrot.slane %v1685_v3, %v1971_v39 }
0x19dc   :  { %2554 = vmatpush3.bf16.msra.mxu1 %v2607_v27 }
0x1aaa   :  { %v2311_v24 = vpop.f32.mrb[52].mxu1 }
0x1aab   :  { %v2312_v23 = vpop.f32.mrb[53].mxu1 }
0x1aac   :  { %v2313_v38 = vadd.f32 %v2312_v23, %v2311_v24  ;;  %v2314_v28 = vpop.f32.mrb[54].mxu1 }
0x1aad   :  { %v2315_v31 = vpop.f32.mrb[55].mxu1 }
0x1aae   :  { %v1946_v29 = vadd.f32 %v2313_v38, %v1814_v25 }
0x1ab0   :  { %v1951_v6 = vmax.f32 %v1946_v29, 0.0 }
0x1ab2   :  { %v1952_v30 = vpack.c.bf16 %v1951_v6, %v1951_v6 }
0x1ab4   :  { %2548 = vmatmul.mubr.bf16.vlgmr.msra.gmra.mrb[56].mxu0 %v1952_v30 }
0x1b87   :  { %v2055_v34 = vpop.f32.mrb[56].mxu0 }
0x1b88   :  { %v2056_v32 = vadd.f32 %v2055_v34, %v1972_v0  ;;  %v2549_v53 = vpop.f32.mrb[57].mxu0 }
0x1b89   :  { %v2058_v51 = vpop.f32.mrb[58].mxu0 }
0x1b8a   :  { %v2061_v40 = vmax.f32 %v2056_v32, 0.0  ;;  %v2550_v35 = vpop.f32.mrb[59].mxu0 }
0x1b8c   :  { %v2062_v41 = vpack.c.bf16 %v2061_v40, %v2061_v40 }
0x1b8e   :  { %2556 = vmatmul.mubr.msk.bf16.vlgmr.msra.gmra.mrb[56].mxu1 %vm188_vm2, %v2062_v41 }
0x1c61   :  { %v2120_v5 = vpop.f32.mrb[56].mxu1 }
0x1c62   :  { %v2121_v46 = vadd.f32 %v2120_v5, %v2070_v2  ;;  %v2557_v26 = vpop.f32.mrb[57].mxu1 }
0x1c63   :  { %v2123_v33 = vpop.f32.mrb[58].mxu1 }
0x1c64   :  { %v2126_v47 = vmax.f32 %v2121_v46, 0.0  ;;  %v2558_v48 = vpop.f32.mrb[59].mxu1 }
0x1c66   :  { %2127 = vst [vmem:[%s3369_s9] sm:$0xff] %v2126_v47 }
0x1c67   :  { %2132 = vsyncpa [#allocation3], 1 }

</bundles_post_ra>
